<compile_context>
chip_gen: v7x
topology: tpu7x:2x2x1
jax: 0.10.0
libtpu: 0.0.40
codegen_flags: <defaults>
</compile_context>

<pallas_src>
import jax
import jax.numpy as jnp
from jax.experimental import pallas as pl
from jax.experimental.pallas import tpu as pltpu

# ----------------------------- configuration -----------------------------
IN_CHANNELS = 1           # greyscale
H = W = 8                 # spatial
P = H * W                 # pixels per sample (= 64)
VOCAB_SIZE = 16           # integer range of raw pixel values
N_DIM = 3                 # embedding dim per channel
EMB_DIM = IN_CHANNELS * N_DIM
D_IN = EMB_DIM + 2        # embedded channels + (x, y) positional encoding
N_FEATURES = 128          # projected feature width (lane friendly)
HIDDEN_DIM = 64           # logical PFF hidden width
HIDDEN_PAD = 128          # zero-padded hidden width (lane dense)
VOCAB_PAD = 128           # one-hot width (lane dense)
N_CONTROL_MODULES = 2     # number of PFF blocks
N_LINEARS = 2             # number of feature-wise residual layers
ACTION_SPACE = 8          # discrete actions
NEG_INF = -1e30           # pad-logit value so log_softmax ignores pad lanes

NF = N_FEATURES
N_RES_BLOCKS = N_CONTROL_MODULES + N_LINEARS

SPT = 2                   # samples per row tile
TILE_ROWS = SPT * P       # 128 rows per tile (lane/sublane friendly)
OUT_ROWS = 8              # padded output sublanes per tile (unmasked store)

# Weight slab: (N_W_BLOCKS * 128, 128) bf16, 128-row blocks:
#   block 0                  : fused one-hot-embedding x projection (VOCAB_PAD, NF)
#   blocks 1 .. 2*(M+L)      : (w1, w2) pairs for PFF + feature-wise layers
#   last block               : actor head (cols >= ACTION_SPACE are zero)
N_W_BLOCKS = 1 + 2 * N_RES_BLOCKS + 1

# Bias slab (f32, (P + 16, 128)):
#   rows 0..P-1              : fused positional-encoding projection + proj_b,
#                              stored ONCE per pixel (not tiled per sample)
#   rows P..P+15             : densely packed per-layer bias rows:
#                              (b1, b2) pairs then the actor-head bias
N_BIAS_ROWS = 2 * N_RES_BLOCKS + 1
N_BIAS_PAD = 16
B_SLAB_ROWS = P + N_BIAS_PAD


# ------------------------------ Pallas kernel -----------------------------
def control_actor_kernel(state_ref, w_ref, b_ref, out_ref):
    f32 = jnp.float32
    bf16 = jnp.bfloat16

    def wblk(i):                               # i-th (128, 128) bf16 weight block
        return w_ref[i * NF:(i + 1) * NF, :]

    bias_blk = b_ref[P:P + N_BIAS_PAD, :]      # (16, 128) f32, densely packed rows

    def bias(j):                               # j-th (1, 128) f32 bias row
        return bias_blk[j:j + 1, :]

    def mxu(a, w):                             # bf16 MXU operands, f32 accumulation
        return jnp.dot(a.astype(bf16), w, preferred_element_type=f32)

    # --- embedding + positional encoding + projection, fused as one matmul:
    #     one_hot(pixel) @ (emb_table @ proj_w[:EMB_DIM])
    #       + (pos @ proj_w[EMB_DIM:] + proj_b)            (pre-folded in slabs)
    # state_ref is lane-broadcast int32 -> dense VPU compare, no lane splat.
    lanes = jax.lax.broadcasted_iota(jnp.int32, (TILE_ROWS, VOCAB_PAD), 1)
    onehot = (state_ref[...] == lanes).astype(bf16)                # (128, 128)
    proj = jnp.dot(onehot, wblk(0), preferred_element_type=f32)    # (128, NF)
    bias0 = b_ref[0:P, :]                                          # (P, NF)
    # copy-free reshape (rows split at multiples of 8); bias0 broadcasts to
    # both samples of the tile; reshape back is also copy-free.
    x = (proj.reshape(SPT, P, NF) + bias0).reshape(TILE_ROWS, NF)

    # --- residual position-wise feed-forward blocks (per pixel), lane-dense.
    wi, bj = 1, 0
    for _ in range(N_CONTROL_MODULES):
        h = jnp.maximum(mxu(x, wblk(wi)) + bias(bj), 0.0)
        x = x + mxu(h, wblk(wi + 1)) + bias(bj + 1)
        wi += 2
        bj += 2

    # --- max-pool over pixels -> per-sample feature vector, padded to 8 rows
    #     so the rest of the chain and the final store are full (8, 128) tiles.
    pooled = jnp.max(x.reshape(SPT, P, NF), axis=1)                # (SPT, NF)
    pooled = jnp.concatenate(
        [pooled, jnp.zeros((OUT_ROWS - SPT, NF), f32)], axis=0)    # (8, NF)

    # --- residual feature-wise feed-forward layers (pad rows are don't-care).
    for _ in range(N_LINEARS):
        h = jnp.maximum(mxu(pooled, wblk(wi)) + bias(bj), 0.0)
        pooled = pooled + mxu(h, wblk(wi + 1)) + bias(bj + 1)
        wi += 2
        bj += 2

    # --- actor head: linear + numerically stable log_softmax over 128 lanes.
    #     Pad action lanes are masked to -1e30 in-kernel (f32), so exp() of
    #     them is exactly 0 and the first ACTION_SPACE lanes equal
    #     log_softmax over the real logits.
    logits = mxu(pooled, wblk(wi)) + bias(bj)                      # (8, 128)
    lane_id = jax.lax.broadcasted_iota(jnp.int32, (OUT_ROWS, NF), 1)
    logits = jnp.where(lane_id < ACTION_SPACE, logits, NEG_INF)
    z = logits - jnp.max(logits, axis=-1, keepdims=True)
    lse = jnp.log(jnp.sum(jnp.exp(z), axis=-1, keepdims=True))
    out_ref[...] = z - lse                     # full (8, 128) unmasked store


def _pallas_control_actor(state_bcast, w_slab, b_slab, num_tiles):
    flops_per_tile = (2 * TILE_ROWS * VOCAB_PAD * NF
                      + N_CONTROL_MODULES * 2 * 2 * TILE_ROWS * NF * NF
                      + N_LINEARS * 2 * 2 * OUT_ROWS * NF * NF
                      + 2 * OUT_ROWS * NF * NF)
    bytes_accessed = (state_bcast.size * 4 + w_slab.size * 2 + b_slab.size * 4
                      + num_tiles * OUT_ROWS * NF * 4)
    return pl.pallas_call(
        control_actor_kernel,
        out_shape=jax.ShapeDtypeStruct((num_tiles * OUT_ROWS, NF), jnp.float32),
        grid_spec=pltpu.PrefetchScalarGridSpec(
            num_scalar_prefetch=0,
            grid=(num_tiles,),
            in_specs=[
                pl.BlockSpec((TILE_ROWS, VOCAB_PAD), lambda t: (t, 0)),
                pl.BlockSpec((N_W_BLOCKS * NF, NF), lambda t: (0, 0)),
                pl.BlockSpec((B_SLAB_ROWS, NF), lambda t: (0, 0)),
            ],
            out_specs=pl.BlockSpec((OUT_ROWS, NF), lambda t: (t, 0)),
        ),
        compiler_params=pltpu.CompilerParams(
            dimension_semantics=("parallel",)),
        cost_estimate=pl.CostEstimate(
            flops=num_tiles * flops_per_tile,
            transcendentals=num_tiles * (OUT_ROWS * NF + OUT_ROWS),
            bytes_accessed=bytes_accessed),
    )(state_bcast, w_slab, b_slab)


@jax.jit
def control_actor_forward(state, w_slab, b_slab):
    """state: (batch, C, H, W) int32 -> (batch, ACTION_SPACE) float32 log-probs."""
    batch = state.shape[0]
    assert state.shape[1:] == (IN_CHANNELS, H, W), "unexpected state shape"
    assert batch % SPT == 0, "batch must be a multiple of SAMPLES_PER_TILE (2)"
    num_tiles = batch // SPT
    # (b, h, w)-major pixel rows, lane-broadcast so the in-kernel one-hot is a
    # dense VPU compare (avoids a lane-1 masked load on the chain head).
    rows = state.reshape(batch * P, 1).astype(jnp.int32)
    state_bcast = jnp.broadcast_to(rows, (batch * P, VOCAB_PAD))
    out_pad = _pallas_control_actor(state_bcast, w_slab, b_slab, num_tiles)
    out = out_pad.reshape(num_tiles, OUT_ROWS, NF)[:, :SPT, :ACTION_SPACE]
    return out.reshape(batch, ACTION_SPACE)


# --------------------------- parameter packing ----------------------------
def _pos_grid():
    ys, xs = jnp.meshgrid(jnp.linspace(-1.0, 1.0, H),
                          jnp.linspace(-1.0, 1.0, W), indexing="ij")
    return jnp.stack([xs.reshape(-1), ys.reshape(-1)], axis=-1)     # (P, 2)


def pack_params(p):
    """One-time packing of all weights/biases into two lane-dense slabs."""
    f32 = jnp.float32

    # one_hot(px) @ (emb_table @ proj_w[:EMB_DIM]) == emb_table[px] @ proj_w[:EMB_DIM]
    w_ep = p["emb_table"] @ p["proj_w"][:EMB_DIM]                   # (VOCAB, NF)
    w_ep = jnp.zeros((VOCAB_PAD, NF), f32).at[:VOCAB_SIZE].set(w_ep)

    def pad_cols(w):   # (NF, HIDDEN_DIM) -> (NF, 128), zero pad columns
        return jnp.zeros((NF, HIDDEN_PAD), f32).at[:, :HIDDEN_DIM].set(w)

    def pad_rows(w):   # (HIDDEN_DIM, NF) -> (128, NF), zero pad rows
        return jnp.zeros((HIDDEN_PAD, NF), f32).at[:HIDDEN_DIM].set(w)

    act_w = jnp.zeros((NF, NF), f32).at[:, :ACTION_SPACE].set(p["act_w"])

    w_blocks = [w_ep]
    for m in range(N_CONTROL_MODULES):
        w_blocks += [pad_cols(p["pff_w1"][m]), pad_rows(p["pff_w2"][m])]
    for l in range(N_LINEARS):
        w_blocks += [pad_cols(p["lin_w1"][l]), pad_rows(p["lin_w2"][l])]
    w_blocks.append(act_w)
    w_slab = jnp.concatenate(w_blocks, axis=0).astype(jnp.bfloat16)  # (1280, 128)

    # fused first-layer per-pixel bias (stored once, reused for every sample).
    bias0 = _pos_grid() @ p["proj_w"][EMB_DIM:] + p["proj_b"]        # (P, NF)

    def bias_row(b):   # pad a bias vector to 128 lanes with zeros
        b = b.reshape(-1)
        return jnp.zeros((NF,), f32).at[:b.shape[0]].set(b)

    rows = []
    for m in range(N_CONTROL_MODULES):
        rows += [bias_row(p["pff_b1"][m]), bias_row(p["pff_b2"][m])]
    for l in range(N_LINEARS):
        rows += [bias_row(p["lin_b1"][l]), bias_row(p["lin_b2"][l])]
    rows.append(bias_row(p["act_b"]))
    bias_blk = jnp.zeros((N_BIAS_PAD, NF), f32).at[:len(rows)].set(jnp.stack(rows))
    b_slab = jnp.concatenate([bias0, bias_blk], axis=0)              # (80, 128)

    assert w_slab.shape == (N_W_BLOCKS * NF, NF)
    assert b_slab.shape == (B_SLAB_ROWS, NF)
    assert len(rows) == N_BIAS_ROWS
    return w_slab, b_slab


def init_params(key):
    ks = jax.random.split(key, 12)

    def w(k, shape, fan_in):
        return jax.random.normal(k, shape, jnp.float32) / jnp.sqrt(fan_in)

    return {
        "emb_table": w(ks[0], (VOCAB_SIZE, N_DIM), 1.0),
        "proj_w": w(ks[1], (D_IN, N_FEATURES), D_IN),
        "proj_b": jnp.zeros((1, N_FEATURES), jnp.float32),
        "pff_w1": w(ks[2], (N_CONTROL_MODULES, N_FEATURES, HIDDEN_DIM), N_FEATURES),
        "pff_b1": 0.01 * w(ks[3], (N_CONTROL_MODULES, 1, HIDDEN_DIM), 1.0),
        "pff_w2": w(ks[4], (N_CONTROL_MODULES, HIDDEN_DIM, N_FEATURES), HIDDEN_DIM),
        "pff_b2": 0.01 * w(ks[5], (N_CONTROL_MODULES, 1, N_FEATURES), 1.0),
        "lin_w1": w(ks[6], (N_LINEARS, N_FEATURES, HIDDEN_DIM), N_FEATURES),
        "lin_b1": 0.01 * w(ks[7], (N_LINEARS, 1, HIDDEN_DIM), 1.0),
        "lin_w2": w(ks[8], (N_LINEARS, HIDDEN_DIM, N_FEATURES), HIDDEN_DIM),
        "lin_b2": 0.01 * w(ks[9], (N_LINEARS, 1, N_FEATURES), 1.0),
        "act_w": w(ks[10], (N_FEATURES, ACTION_SPACE), N_FEATURES),
        "act_b": 0.01 * w(ks[11], (1, ACTION_SPACE), 1.0),
    }


# ------------------------------ references --------------------------------
def reference_f32(state, p):
    """Pure-f32 JAX reference of the module spec (gather + concat + project)."""
    batch = state.shape[0]
    emb = p["emb_table"][state]                                # (b,C,H,W,n_dim)
    emb = jnp.transpose(emb, (0, 2, 3, 1, 4)).reshape(batch, P, EMB_DIM)
    pos = jnp.broadcast_to(_pos_grid()[None], (batch, P, 2))
    x_in = jnp.concatenate([emb, pos], axis=-1)
    x = jnp.einsum("bpd,df->bpf", x_in, p["proj_w"]) + p["proj_b"]
    for m in range(N_CONTROL_MODULES):
        h = jax.nn.relu(jnp.einsum("bpf,fh->bph", x, p["pff_w1"][m]) + p["pff_b1"][m])
        x = x + jnp.einsum("bph,hf->bpf", h, p["pff_w2"][m]) + p["pff_b2"][m]
    pooled = jnp.max(x, axis=1)
    for l in range(N_LINEARS):
        h = jax.nn.relu(pooled @ p["lin_w1"][l] + p["lin_b1"][l])
        pooled = pooled + h @ p["lin_w2"][l] + p["lin_b2"][l]
    logits = pooled @ p["act_w"] + p["act_b"]
    return jax.nn.log_softmax(logits, axis=1)


def reference_mirror(state, p):
    """Reference mirroring the kernel numerics (bf16 MXU operands with f32
    accumulation, folded embedding/positional projection) for a tight check."""
    batch = state.shape[0]
    f32, bf16 = jnp.float32, jnp.bfloat16

    def dot_bf16(a, w):
        return jnp.dot(a.astype(bf16), w.astype(bf16), preferred_element_type=f32)

    idx = state.reshape(batch * P)
    w_ep = (p["emb_table"] @ p["proj_w"][:EMB_DIM]).astype(bf16)
    onehot = jax.nn.one_hot(idx, VOCAB_SIZE, dtype=bf16)
    bias0 = _pos_grid() @ p["proj_w"][EMB_DIM:] + p["proj_b"]
    x = jnp.dot(onehot, w_ep, preferred_element_type=f32) + jnp.tile(bias0, (batch, 1))
    for m in range(N_CONTROL_MODULES):
        h = jnp.maximum(dot_bf16(x, p["pff_w1"][m]) + p["pff_b1"][m], 0.0)
        x = x + dot_bf16(h, p["pff_w2"][m]) + p["pff_b2"][m]
    pooled = jnp.max(x.reshape(batch, P, NF), axis=1)
    for l in range(N_LINEARS):
        h = jnp.maximum(dot_bf16(pooled, p["lin_w1"][l]) + p["lin_b1"][l], 0.0)
        pooled = pooled + dot_bf16(h, p["lin_w2"][l]) + p["lin_b2"][l]
    logits = dot_bf16(pooled, p["act_w"]) + p["act_b"]
    return jax.nn.log_softmax(logits, axis=1)


# ------------------------------- main --------------------------------------
if __name__ == "__main__":
    key = jax.random.PRNGKey(0)
    k_state, k_state_big, k_params = jax.random.split(key, 3)

    params = init_params(k_params)
    w_slab, b_slab = pack_params(params)          # one-time packing (2 HBM slabs)

    def check(state):
        lp = jax.block_until_ready(control_actor_forward(state, w_slab, b_slab))
        assert lp.shape == (state.shape[0], ACTION_SPACE)
        # Tight check against a reference mirroring the kernel's exact numerics.
        assert jnp.allclose(lp, reference_mirror(state, params),
                            rtol=2e-3, atol=2e-3), "mismatch vs bf16-mirror ref"
        # Coarse structural check against the pure-f32 module spec.
        assert jnp.allclose(lp, reference_f32(state, params),
                            rtol=0.05, atol=0.25), "mismatch vs f32 reference"
        # log-softmax rows must exponentiate-sum to ~1
        assert jnp.allclose(jnp.sum(jnp.exp(lp), axis=1), 1.0, atol=1e-3)

    # Small demo batch (grid = (1,), effectively gridless).
    state_small = jax.random.randint(
        k_state, (2, IN_CHANNELS, H, W), 0, VOCAB_SIZE, dtype=jnp.int32)
    check(state_small)

    # Larger batch exercising the parallel row-tile grid (4 tiles).
    state_big = jax.random.randint(
        k_state_big, (8, IN_CHANNELS, H, W), 0, VOCAB_SIZE, dtype=jnp.int32)
    check(state_big)

    print("KERNEL_OK")
</pallas_src>

<mosaic_0001>
module attributes {stable_mosaic.version = 11 : i64} {
  func.func @control_actor_kernel(%arg0: i32, %arg1: memref<128x128xi32, #tpu.memory_space<vmem>>, %arg2: memref<1280x128xbf16, #tpu.memory_space<vmem>>, %arg3: memref<80x128xf32, #tpu.memory_space<vmem>>, %arg4: memref<8x128xf32, #tpu.memory_space<vmem>>) attributes {dimension_semantics = [#tpu.dimension_semantics<parallel>], iteration_bounds = array<i64: 1>, scalar_prefetch = 0 : i64, scratch_operands = 0 : i64, tpu.core_type = #tpu.core_type<tc>, window_params = [{transform_indices = @transform_0, window_bounds = array<i64: 128, 128>}, {pipeline_mode = #tpu.pipeline_mode<synchronous>, transform_indices = @transform_1, window_bounds = array<i64: 1280, 128>}, {pipeline_mode = #tpu.pipeline_mode<synchronous>, transform_indices = @transform_2, window_bounds = array<i64: 80, 128>}, {transform_indices = @transform_3, window_bounds = array<i64: 8, 128>}]} {
    %c64 = arith.constant 64 : index
    %c0 = arith.constant 0 : index
    %0 = vector.load %arg3[%c64, %c0] : memref<80x128xf32, #tpu.memory_space<vmem>>, vector<16x128xf32>
    %1 = tpu.iota {dimensions = array<i32: 1>} : vector<128x128xi32>
    %c0_0 = arith.constant 0 : index
    %c0_1 = arith.constant 0 : index
    %2 = vector.load %arg1[%c0_0, %c0_1] : memref<128x128xi32, #tpu.memory_space<vmem>>, vector<128x128xi32>
    %3 = arith.cmpi eq, %2, %1 : vector<128x128xi32>
    %4 = arith.extui %3 : vector<128x128xi1> to vector<128x128xi32>
    %5 = arith.sitofp %4 : vector<128x128xi32> to vector<128x128xf32>
    %6 = arith.truncf %5 : vector<128x128xf32> to vector<128x128xbf16>
    %c0_2 = arith.constant 0 : index
    %c0_3 = arith.constant 0 : index
    %7 = vector.load %arg2[%c0_2, %c0_3] : memref<1280x128xbf16, #tpu.memory_space<vmem>>, vector<128x128xbf16>
    %cst = arith.constant dense<0.000000e+00> : vector<128x128xf32>
    %8 = tpu.matmul %6, %7, %cst {dimension_numbers = #tpu.dot_dimension_numbers<[1], [0], [0], [1], [0, 0, 1, 1], [], []>} : vector<128x128xbf16>, vector<128x128xbf16>, vector<128x128xf32> -> vector<128x128xf32>
    %c0_4 = arith.constant 0 : index
    %c0_5 = arith.constant 0 : index
    %9 = vector.load %arg3[%c0_4, %c0_5] : memref<80x128xf32, #tpu.memory_space<vmem>>, vector<64x128xf32>
    %10 = vector.shape_cast %8 : vector<128x128xf32> to vector<2x64x128xf32>
    %11 = vector.shape_cast %9 : vector<64x128xf32> to vector<1x64x128xf32>
    %12 = vector.broadcast %11 : vector<1x64x128xf32> to vector<2x64x128xf32>
    %13 = arith.addf %10, %12 : vector<2x64x128xf32>
    %14 = vector.shape_cast %13 : vector<2x64x128xf32> to vector<128x128xf32>
    %c128 = arith.constant 128 : index
    %c0_6 = arith.constant 0 : index
    %15 = vector.load %arg2[%c128, %c0_6] : memref<1280x128xbf16, #tpu.memory_space<vmem>>, vector<128x128xbf16>
    %16 = arith.truncf %14 : vector<128x128xf32> to vector<128x128xbf16>
    %cst_7 = arith.constant dense<0.000000e+00> : vector<128x128xf32>
    %17 = tpu.matmul %16, %15, %cst_7 {dimension_numbers = #tpu.dot_dimension_numbers<[1], [0], [0], [1], [0, 0, 1, 1], [], []>} : vector<128x128xbf16>, vector<128x128xbf16>, vector<128x128xf32> -> vector<128x128xf32>
    %18 = vector.extract_strided_slice %0 {offsets = [0, 0], sizes = [1, 128], strides = [1, 1]} : vector<16x128xf32> to vector<1x128xf32>
    %19 = vector.broadcast %18 : vector<1x128xf32> to vector<128x128xf32>
    %20 = arith.addf %17, %19 : vector<128x128xf32>
    %cst_8 = arith.constant 0.000000e+00 : f32
    %21 = vector.broadcast %cst_8 : f32 to vector<128x128xf32>
    %22 = arith.maximumf %20, %21 : vector<128x128xf32>
    %c256 = arith.constant 256 : index
    %c0_9 = arith.constant 0 : index
    %23 = vector.load %arg2[%c256, %c0_9] : memref<1280x128xbf16, #tpu.memory_space<vmem>>, vector<128x128xbf16>
    %24 = arith.truncf %22 : vector<128x128xf32> to vector<128x128xbf16>
    %cst_10 = arith.constant dense<0.000000e+00> : vector<128x128xf32>
    %25 = tpu.matmul %24, %23, %cst_10 {dimension_numbers = #tpu.dot_dimension_numbers<[1], [0], [0], [1], [0, 0, 1, 1], [], []>} : vector<128x128xbf16>, vector<128x128xbf16>, vector<128x128xf32> -> vector<128x128xf32>
    %26 = arith.addf %14, %25 : vector<128x128xf32>
    %27 = vector.extract_strided_slice %0 {offsets = [1, 0], sizes = [1, 128], strides = [1, 1]} : vector<16x128xf32> to vector<1x128xf32>
    %28 = vector.broadcast %27 : vector<1x128xf32> to vector<128x128xf32>
    %29 = arith.addf %26, %28 : vector<128x128xf32>
    %c384 = arith.constant 384 : index
    %c0_11 = arith.constant 0 : index
    %30 = vector.load %arg2[%c384, %c0_11] : memref<1280x128xbf16, #tpu.memory_space<vmem>>, vector<128x128xbf16>
    %31 = arith.truncf %29 : vector<128x128xf32> to vector<128x128xbf16>
    %cst_12 = arith.constant dense<0.000000e+00> : vector<128x128xf32>
    %32 = tpu.matmul %31, %30, %cst_12 {dimension_numbers = #tpu.dot_dimension_numbers<[1], [0], [0], [1], [0, 0, 1, 1], [], []>} : vector<128x128xbf16>, vector<128x128xbf16>, vector<128x128xf32> -> vector<128x128xf32>
    %33 = vector.extract_strided_slice %0 {offsets = [2, 0], sizes = [1, 128], strides = [1, 1]} : vector<16x128xf32> to vector<1x128xf32>
    %34 = vector.broadcast %33 : vector<1x128xf32> to vector<128x128xf32>
    %35 = arith.addf %32, %34 : vector<128x128xf32>
    %cst_13 = arith.constant 0.000000e+00 : f32
    %36 = vector.broadcast %cst_13 : f32 to vector<128x128xf32>
    %37 = arith.maximumf %35, %36 : vector<128x128xf32>
    %c512 = arith.constant 512 : index
    %c0_14 = arith.constant 0 : index
    %38 = vector.load %arg2[%c512, %c0_14] : memref<1280x128xbf16, #tpu.memory_space<vmem>>, vector<128x128xbf16>
    %39 = arith.truncf %37 : vector<128x128xf32> to vector<128x128xbf16>
    %cst_15 = arith.constant dense<0.000000e+00> : vector<128x128xf32>
    %40 = tpu.matmul %39, %38, %cst_15 {dimension_numbers = #tpu.dot_dimension_numbers<[1], [0], [0], [1], [0, 0, 1, 1], [], []>} : vector<128x128xbf16>, vector<128x128xbf16>, vector<128x128xf32> -> vector<128x128xf32>
    %41 = arith.addf %29, %40 : vector<128x128xf32>
    %42 = vector.extract_strided_slice %0 {offsets = [3, 0], sizes = [1, 128], strides = [1, 1]} : vector<16x128xf32> to vector<1x128xf32>
    %43 = vector.broadcast %42 : vector<1x128xf32> to vector<128x128xf32>
    %44 = arith.addf %41, %43 : vector<128x128xf32>
    %45 = vector.shape_cast %44 : vector<128x128xf32> to vector<2x64x128xf32>
    %cst_16 = arith.constant dense<0xFF800000> : vector<2x128xf32>
    %46 = vector.multi_reduction <maximumf>, %45, %cst_16 [1] : vector<2x64x128xf32> to vector<2x128xf32>
    %cst_17 = arith.constant 0.000000e+00 : f32
    %47 = vector.broadcast %cst_17 : f32 to vector<6x128xf32>
    %48 = tpu.concatenate %46, %47 in 0 : vector<2x128xf32>, vector<6x128xf32> -> vector<8x128xf32>
    %c640 = arith.constant 640 : index
    %c0_18 = arith.constant 0 : index
    %49 = vector.load %arg2[%c640, %c0_18] : memref<1280x128xbf16, #tpu.memory_space<vmem>>, vector<128x128xbf16>
    %50 = arith.truncf %48 : vector<8x128xf32> to vector<8x128xbf16>
    %cst_19 = arith.constant dense<0.000000e+00> : vector<8x128xf32>
    %51 = tpu.matmul %50, %49, %cst_19 {dimension_numbers = #tpu.dot_dimension_numbers<[1], [0], [0], [1], [0, 0, 1, 1], [], []>} : vector<8x128xbf16>, vector<128x128xbf16>, vector<8x128xf32> -> vector<8x128xf32>
    %52 = vector.extract_strided_slice %0 {offsets = [4, 0], sizes = [1, 128], strides = [1, 1]} : vector<16x128xf32> to vector<1x128xf32>
    %53 = vector.broadcast %52 : vector<1x128xf32> to vector<8x128xf32>
    %54 = arith.addf %51, %53 : vector<8x128xf32>
    %cst_20 = arith.constant 0.000000e+00 : f32
    %55 = vector.broadcast %cst_20 : f32 to vector<8x128xf32>
    %56 = arith.maximumf %54, %55 : vector<8x128xf32>
    %c768 = arith.constant 768 : index
    %c0_21 = arith.constant 0 : index
    %57 = vector.load %arg2[%c768, %c0_21] : memref<1280x128xbf16, #tpu.memory_space<vmem>>, vector<128x128xbf16>
    %58 = arith.truncf %56 : vector<8x128xf32> to vector<8x128xbf16>
    %cst_22 = arith.constant dense<0.000000e+00> : vector<8x128xf32>
    %59 = tpu.matmul %58, %57, %cst_22 {dimension_numbers = #tpu.dot_dimension_numbers<[1], [0], [0], [1], [0, 0, 1, 1], [], []>} : vector<8x128xbf16>, vector<128x128xbf16>, vector<8x128xf32> -> vector<8x128xf32>
    %60 = arith.addf %48, %59 : vector<8x128xf32>
    %61 = vector.extract_strided_slice %0 {offsets = [5, 0], sizes = [1, 128], strides = [1, 1]} : vector<16x128xf32> to vector<1x128xf32>
    %62 = vector.broadcast %61 : vector<1x128xf32> to vector<8x128xf32>
    %63 = arith.addf %60, %62 : vector<8x128xf32>
    %c896 = arith.constant 896 : index
    %c0_23 = arith.constant 0 : index
    %64 = vector.load %arg2[%c896, %c0_23] : memref<1280x128xbf16, #tpu.memory_space<vmem>>, vector<128x128xbf16>
    %65 = arith.truncf %63 : vector<8x128xf32> to vector<8x128xbf16>
    %cst_24 = arith.constant dense<0.000000e+00> : vector<8x128xf32>
    %66 = tpu.matmul %65, %64, %cst_24 {dimension_numbers = #tpu.dot_dimension_numbers<[1], [0], [0], [1], [0, 0, 1, 1], [], []>} : vector<8x128xbf16>, vector<128x128xbf16>, vector<8x128xf32> -> vector<8x128xf32>
    %67 = vector.extract_strided_slice %0 {offsets = [6, 0], sizes = [1, 128], strides = [1, 1]} : vector<16x128xf32> to vector<1x128xf32>
    %68 = vector.broadcast %67 : vector<1x128xf32> to vector<8x128xf32>
    %69 = arith.addf %66, %68 : vector<8x128xf32>
    %cst_25 = arith.constant 0.000000e+00 : f32
    %70 = vector.broadcast %cst_25 : f32 to vector<8x128xf32>
    %71 = arith.maximumf %69, %70 : vector<8x128xf32>
    %c1024 = arith.constant 1024 : index
    %c0_26 = arith.constant 0 : index
    %72 = vector.load %arg2[%c1024, %c0_26] : memref<1280x128xbf16, #tpu.memory_space<vmem>>, vector<128x128xbf16>
    %73 = arith.truncf %71 : vector<8x128xf32> to vector<8x128xbf16>
    %cst_27 = arith.constant dense<0.000000e+00> : vector<8x128xf32>
    %74 = tpu.matmul %73, %72, %cst_27 {dimension_numbers = #tpu.dot_dimension_numbers<[1], [0], [0], [1], [0, 0, 1, 1], [], []>} : vector<8x128xbf16>, vector<128x128xbf16>, vector<8x128xf32> -> vector<8x128xf32>
    %75 = arith.addf %63, %74 : vector<8x128xf32>
    %76 = vector.extract_strided_slice %0 {offsets = [7, 0], sizes = [1, 128], strides = [1, 1]} : vector<16x128xf32> to vector<1x128xf32>
    %77 = vector.broadcast %76 : vector<1x128xf32> to vector<8x128xf32>
    %78 = arith.addf %75, %77 : vector<8x128xf32>
    %c1152 = arith.constant 1152 : index
    %c0_28 = arith.constant 0 : index
    %79 = vector.load %arg2[%c1152, %c0_28] : memref<1280x128xbf16, #tpu.memory_space<vmem>>, vector<128x128xbf16>
    %80 = arith.truncf %78 : vector<8x128xf32> to vector<8x128xbf16>
    %cst_29 = arith.constant dense<0.000000e+00> : vector<8x128xf32>
    %81 = tpu.matmul %80, %79, %cst_29 {dimension_numbers = #tpu.dot_dimension_numbers<[1], [0], [0], [1], [0, 0, 1, 1], [], []>} : vector<8x128xbf16>, vector<128x128xbf16>, vector<8x128xf32> -> vector<8x128xf32>
    %82 = vector.extract_strided_slice %0 {offsets = [8, 0], sizes = [1, 128], strides = [1, 1]} : vector<16x128xf32> to vector<1x128xf32>
    %83 = vector.broadcast %82 : vector<1x128xf32> to vector<8x128xf32>
    %84 = arith.addf %81, %83 : vector<8x128xf32>
    %85 = tpu.iota {dimensions = array<i32: 1>} : vector<8x128xi32>
    %c8_i32 = arith.constant 8 : i32
    %86 = vector.broadcast %c8_i32 : i32 to vector<8x128xi32>
    %87 = arith.cmpi slt, %85, %86 : vector<8x128xi32>
    %cst_30 = arith.constant -1.000000e+30 : f32
    %88 = vector.broadcast %cst_30 : f32 to vector<8x128xf32>
    %89 = arith.select %87, %84, %88 : vector<8x128xi1>, vector<8x128xf32>
    %cst_31 = arith.constant dense<0xFF800000> : vector<8xf32>
    %90 = vector.multi_reduction <maximumf>, %89, %cst_31 [1] : vector<8x128xf32> to vector<8xf32>
    %91 = vector.shape_cast %90 : vector<8xf32> to vector<8x1xf32>
    %92 = vector.broadcast %91 : vector<8x1xf32> to vector<8x128xf32>
    %93 = arith.subf %89, %92 : vector<8x128xf32>
    %94 = math.exp %93 : vector<8x128xf32>
    %cst_32 = arith.constant dense<0.000000e+00> : vector<8xf32>
    %95 = vector.multi_reduction <add>, %94, %cst_32 [1] : vector<8x128xf32> to vector<8xf32>
    %96 = vector.shape_cast %95 : vector<8xf32> to vector<8x1xf32>
    %97 = math.log %96 : vector<8x1xf32>
    %98 = vector.broadcast %97 : vector<8x1xf32> to vector<8x128xf32>
    %99 = arith.subf %93, %98 : vector<8x128xf32>
    %c0_33 = arith.constant 0 : index
    %c0_34 = arith.constant 0 : index
    %100 = vector.load %arg4[%c0_33, %c0_34] : memref<8x128xf32, #tpu.memory_space<vmem>>, vector<8x128xf32>
    tpu.vector_store %arg4[%c0_33, %c0_34], %99 {strides = array<i32>} : memref<8x128xf32, #tpu.memory_space<vmem>>, vector<8x128xf32>,
    return
  }
  func.func @transform_0(%arg0: i32) -> (i32, i32) {
    %c0_i32 = arith.constant 0 : i32
    %c0_i32_0 = arith.constant 0 : i32
    return %arg0, %c0_i32 : i32, i32
  }
  func.func @transform_1(%arg0: i32) -> (i32, i32) {
    %c0_i32 = arith.constant 0 : i32
    %c0_i32_0 = arith.constant 0 : i32
    %c0_i32_1 = arith.constant 0 : i32
    return %c0_i32, %c0_i32_0 : i32, i32
  }
  func.func @transform_2(%arg0: i32) -> (i32, i32) {
    %c0_i32 = arith.constant 0 : i32
    %c0_i32_0 = arith.constant 0 : i32
    %c0_i32_1 = arith.constant 0 : i32
    return %c0_i32, %c0_i32_0 : i32, i32
  }
  func.func @transform_3(%arg0: i32) -> (i32, i32) {
    %c0_i32 = arith.constant 0 : i32
    %c0_i32_0 = arith.constant 0 : i32
    return %arg0, %c0_i32 : i32, i32
  }
}

</mosaic_0001>

<bundles_post_ra>
// kernel: control_actor_forward.1
= control target key start
LH: loop header
LB: loop body
LE: loop exit
PB: predicated region body
PF: predicated region fallthrough
CT: control target
= control target key end

     0   :  { %8 = vsyncpa [#allocation3], 0  ;;  %s2294_s12 = smov [#allocation2]   ;;  %s2676_s0 = inlined_call_operand.vmem [shape: s32[128,128], index: 0, kind: input, shape index: {}]   ;;  %s2677_s1 = inlined_call_operand.hbm [shape: bf16[1280,128], index: 1, kind: input, shape index: {}]   ;;  %s2678_s2 = inlined_call_operand.vmem [shape: f32[80,128], index: 2, kind: input, shape index: {}]   ;;  %s2679_s3 = inlined_call_operand.vmem [shape: f32[8,128], index: 3, kind: output, shape index: {}]  }
   0x1   :  { %s16_s13 = sshll.u32 %s2294_s12, 4  ;;  %s2270_s16 = scalar_lea.hbm %s2677_s1, 10240  ;;  %s17_s13 = int_to_ptr.vmem [resolvable:$true] %s16_s13 }
   0x2   :  { %p2271_p0 = scmp.ne.s32.totalorder %s2677_s1, %s2270_s16  ;;  %p2274_p1 = scmp.lt.u32.totalorder %s2270_s16, %s2677_s1 }
   0x4   :  { %p2276_p2 = pnand %p2274_p1, %p2271_p0 }
   0x6   :  { %2279 = shalt.err (!%p2276_p2)
}
   0x7   :  { %s2280_s21 = scalar_lea.vmem %s17_s13, 10240  ;;  %p2285_p4 = scmp.lt.s32.totalorder %s17_s13, %s17_s13 }
   0x8   :  { %p2281_p3 = scmp.ne.s32.totalorder %s17_s13, %s2280_s21  ;;  %p2286_p5 = scmp.lt.s32.totalorder %s2280_s21, %s2280_s21 }
   0xa   :  { %p2287_p6 = por %p2286_p5, %p2285_p4 }
   0xc   :  { %p2288_p7 = pnand %p2287_p6, %p2281_p3 }
   0xe   :  { %2291 = shalt.err (!%p2288_p7)
}
   0xf   :  { %s2295_s22 = smov 64   ;;  %s2296_s23 = smov 4  }
  0x10   :  { %22 = dma.hbm_to_vmem [thread:$0]  %s2677_s1, 10240, %s17_s13, [#allocation3], %s2295_s22, %s2295_s22, %s2296_s23  }
  0x11   :  { %2292 = dma.done.wait [#allocation3], 10240  }
  0x12   :  { %2293 = vsyncadd [#allocation3], 4294957056  ;;  %v2186_v0 = vld [vmem:[#allocation2] sm:$0xff]   ;;  %v2187_v1 = vld [vmem:[#allocation2 + $0x8] sm:$0xff]   ;;  %v31_v2 = vlaneseq  ;;  %v2297_v8 = vmov 1.0|1.0  }
  0x13   :  { %1920 = vmatprep.subr.bf16.mxu0 %v2186_v0  ;;  %v2188_v3 = vld [vmem:[#allocation2 + $0x10] sm:$0xff]   ;;  %v2189_v5 = vld [vmem:[#allocation2 + $0x18] sm:$0xff]   ;;  %v2190_v9 = vld [vmem:[#allocation2 + $0x20] sm:$0xff]  }
  0x14   :  { %1921 = vmatpush3.bf16.msra.mxu0 %v2186_v0  ;;  %v2333_v4 = vand.u32 127, %v31_v2  ;;  %v33_v6 = vld [vmem:[%s2676_s0] sm:$0xff]  ;;  %v34_v7 = vld [vmem:[%s2676_s0 + $0x8] sm:$0xff]  ;;  %v2191_v10 = vld [vmem:[#allocation2 + $0x28] sm:$0xff]  }
  0x15   :  { %1922 = vmatprep.subr.bf16.mxu0 %v2187_v1  ;;  %v35_v11 = vld [vmem:[%s2676_s0 + $0x10] sm:$0xff]  ;;  %v36_v12 = vld [vmem:[%s2676_s0 + $0x18] sm:$0xff]  ;;  %v37_v14 = vld [vmem:[%s2676_s0 + $0x20] sm:$0xff] }
  0x16   :  { %vm49_vm0 = vcmp.eq.s32.totalorder %v33_v6, %v2333_v4  ;;  %vm50_vm1 = vcmp.eq.s32.totalorder %v34_v7, %v2333_v4  ;;  %v2194_v13 = vld [vmem:[#allocation2 + $0x40] sm:$0xff]   ;;  %v2195_v15 = vld [vmem:[#allocation2 + $0x48] sm:$0xff]   ;;  %v38_v16 = vld [vmem:[%s2676_s0 + $0x28] sm:$0xff]  ;;  %vm51_vm3 = vcmp.eq.s32.totalorder %v35_v11, %v2333_v4  ;;  %vm52_vm4 = vcmp.eq.s32.totalorder %v36_v12, %v2333_v4 }
  0x17   :  { %vm1704_vm2 = vmpackc.low %vm50_vm1, %vm49_vm0  ;;  %1952 = vmatprep.subr.bf16.mxu1 %v2194_v13  ;;  %v2192_v17 = vld [vmem:[#allocation2 + $0x30] sm:$0xff]   ;;  %vm53_vm5 = vcmp.eq.s32.totalorder %v37_v14, %v2333_v4  ;;  %vm54_vm6 = vcmp.eq.s32.totalorder %v38_v16, %v2333_v4  ;;  %v2193_v19 = vld [vmem:[#allocation2 + $0x38] sm:$0xff]  }
  0x18   :  { %1923 = vmatpush3.bf16.msra.mxu0 %v2187_v1  ;;  %1936 = vmatprep.mubr.msk.bf16.mxu0 %vm1704_vm2, %v2297_v8  ;;  %v2196_v18 = vld [vmem:[#allocation2 + $0x50] sm:$0xff]   ;;  %v2197_v20 = vld [vmem:[#allocation2 + $0x58] sm:$0xff]   ;;  %vm2360_vm7 = vmpackc.low %vm52_vm4, %vm51_vm3 }
  0x19   :  { %1924 = vmatprep.subr.bf16.mxu0 %v2188_v3  ;;  %1953 = vmatpush3.bf16.msra.mxu1 %v2194_v13  ;;  %v39_v22 = vld [vmem:[%s2676_s0 + $0x30] sm:$0xff]  ;;  %v40_v23 = vld [vmem:[%s2676_s0 + $0x38] sm:$0xff]  ;;  %vm2370_vm8 = vmpackc.low %vm54_vm6, %vm53_vm5 }
  0x1a   :  { %1954 = vmatprep.subr.bf16.mxu1 %v2195_v15  ;;  %v41_v25 = vld [vmem:[%s2676_s0 + $0x40] sm:$0xff]  ;;  %v42_v26 = vld [vmem:[%s2676_s0 + $0x48] sm:$0xff]  ;;  %v2198_v27 = vld [vmem:[#allocation2 + $0x60] sm:$0xff]   ;;  %vm55_vm9 = vcmp.eq.s32.totalorder %v39_v22, %v2333_v4  ;;  %vm56_vm10 = vcmp.eq.s32.totalorder %v40_v23, %v2333_v4 }
  0x1b   :  { %vm57_vm11 = vcmp.eq.s32.totalorder %v41_v25, %v2333_v4  ;;  %vm58_vm12 = vcmp.eq.s32.totalorder %v42_v26, %v2333_v4  ;;  %v2199_v28 = vld [vmem:[#allocation2 + $0x68] sm:$0xff]   ;;  %vm2384_vm13 = vmpackc.low %vm56_vm10, %vm55_vm9  ;;  %v43_v30 = vld [vmem:[%s2676_s0 + $0x50] sm:$0xff]  ;;  %vm1106_vm9 = vcmask 1041409   ;;  %vm1109_vm10 = vcmask 1041408  }
  0x1c   :  { %1925 = vmatpush3.bf16.msra.mxu0 %v2188_v3  ;;  %v44_v31 = vld [vmem:[%s2676_s0 + $0x58] sm:$0xff]  ;;  %vm2394_vm14 = vmpackc.low %vm58_vm12, %vm57_vm11  ;;  %v45_v33 = vld [vmem:[%s2676_s0 + $0x60] sm:$0xff]  ;;  %vm59_vm15 = vcmp.eq.s32.totalorder %v43_v30, %v2333_v4  ;;  %vm1662_vm12 = vcmp.lt.s32.totalorder %v2333_v4, 8 }
  0x1d   :  { %1926 = vmatprep.subr.bf16.mxu0 %v2189_v5  ;;  %1955 = vmatpush3.bf16.msra.mxu1 %v2195_v15  ;;  %v46_v34 = vld [vmem:[%s2676_s0 + $0x68] sm:$0xff]  ;;  %vm60_vm0 = vcmp.eq.s32.totalorder %v44_v31, %v2333_v4  ;;  %vm61_vm1 = vcmp.eq.s32.totalorder %v45_v33, %v2333_v4  ;;  %v47_v35 = vld [vmem:[%s2676_s0 + $0x70] sm:$0xff]  ;;  %v48_v36 = vld [vmem:[%s2676_s0 + $0x78] sm:$0xff] }
  0x1e   :  { %1956 = vmatprep.subr.bf16.mxu1 %v2196_v18  ;;  %vm62_vm2 = vcmp.eq.s32.totalorder %v46_v34, %v2333_v4  ;;  %vm1714_vm3 = vmpackc.low %vm60_vm0, %vm59_vm15  ;;  %vm63_vm5 = vcmp.eq.s32.totalorder %v47_v35, %v2333_v4  ;;  %vm64_vm6 = vcmp.eq.s32.totalorder %v48_v36, %v2333_v4  ;;  %v2200_v37 = vld [vmem:[#allocation2 + $0x70] sm:$0xff]   ;;  %v2201_v38 = vld [vmem:[#allocation2 + $0x78] sm:$0xff]  }
  0x1f   :  { %vm1716_vm4 = vmpackc.low %vm62_vm2, %vm61_vm1  ;;  %v2202_v39 = vld [vmem:[#allocation2 + $0x80] sm:$0xff]   ;;  %v2203_v40 = vld [vmem:[#allocation2 + $0x88] sm:$0xff]  }
  0x20   :  { %1927 = vmatpush3.bf16.msra.mxu0 %v2189_v5  ;;  %v2204_v41 = vld [vmem:[#allocation2 + $0x90] sm:$0xff]   ;;  %v2205_v42 = vld [vmem:[#allocation2 + $0x98] sm:$0xff]   ;;  %v2206_v43 = vld [vmem:[#allocation2 + $0xa0] sm:$0xff]  }
  0x21   :  { %1928 = vmatprep.subr.bf16.mxu0 %v2190_v9  ;;  %1957 = vmatpush3.bf16.msra.mxu1 %v2196_v18  ;;  %v2207_v44 = vld [vmem:[#allocation2 + $0xa8] sm:$0xff]   ;;  %v266_v48 = vld [vmem:[%s2678_s2] sm:$0xff]  ;;  %v267_v49 = vld [vmem:[%s2678_s2 + $0x8] sm:$0xff] }
  0x22   :  { %1958 = vmatprep.subr.bf16.mxu1 %v2197_v20  ;;  %v269_v46 = vld [vmem:[%s2678_s2 + $0x18] sm:$0xff]  ;;  %v268_v50 = vld [vmem:[%s2678_s2 + $0x10] sm:$0xff]  ;;  %v270_v62 = vld [vmem:[%s2678_s2 + $0x20] sm:$0xff] }
  0x23   :  { %v273_v60 = vld [vmem:[%s2678_s2 + $0x38] sm:$0xff]  ;;  %v271_v63 = vld [vmem:[%s2678_s2 + $0x28] sm:$0xff]  ;;  %v272_v0 = vld [vmem:[%s2678_s2 + $0x30] sm:$0xff] }
  0x24   :  { %1929 = vmatpush3.bf16.msra.mxu0 %v2190_v9  ;;  %v2208_v31 = vld [vmem:[#allocation2 + $0xb0] sm:$0xff]   ;;  %v2209_v32 = vld [vmem:[#allocation2 + $0xb8] sm:$0xff]   ;;  %v2210_v33 = vld [vmem:[#allocation2 + $0xc0] sm:$0xff]  }
  0x25   :  { %1930 = vmatprep.subr.bf16.mxu0 %v2191_v10  ;;  %1959 = vmatpush3.bf16.msra.mxu1 %v2197_v20  ;;  %v2211_v34 = vld [vmem:[#allocation2 + $0xc8] sm:$0xff]   ;;  %v2212_v35 = vld [vmem:[#allocation2 + $0xd0] sm:$0xff]   ;;  %v2213_v36 = vld [vmem:[#allocation2 + $0xd8] sm:$0xff]  }
  0x26   :  { %1960 = vmatprep.subr.bf16.mxu1 %v2198_v27  ;;  %vm1760_vm11 = vmpackc.low %vm1109_vm10, %vm1109_vm10 }
  0x28   :  { %1931 = vmatpush3.bf16.msra.mxu0 %v2191_v10 }
  0x29   :  { %1932 = vmatprep.subr.bf16.mxu0 %v2192_v17  ;;  %1961 = vmatpush3.bf16.msra.mxu1 %v2198_v27 }
  0x2a   :  { %1962 = vmatprep.subr.bf16.mxu1 %v2199_v28 }
  0x2c   :  { %1933 = vmatpush3.bf16.msra.mxu0 %v2192_v17 }
  0x2d   :  { %1934 = vmatprep.subr.bf16.mxu0 %v2193_v19  ;;  %1963 = vmatpush3.bf16.msra.mxu1 %v2199_v28 }
  0x2e   :  { %1964 = vmatprep.subr.bf16.mxu1 %v2200_v37 }
  0x30   :  { %1935 = vmatpush3.bf16.msra.mxu0 %v2193_v19 }
  0x31   :  { %1965 = vmatpush3.bf16.msra.mxu1 %v2200_v37  ;;  %1984 = vmatprep.subr.bf16.mxu0 %v2202_v39  ;;  %v2214_v37 = vld [vmem:[#allocation2 + $0xe0] sm:$0xff]  }
  0x32   :  { %1966 = vmatprep.subr.bf16.mxu1 %v2201_v38 }
  0x33   :  { %1937 = vmatmul.mubr.msk.bf16.vlgmr.msra.gmra.mrb[0].mxu0 %vm2360_vm7, %v2297_v8  ;;  %vm1718_vm7 = vmpackc.low %vm64_vm6, %vm63_vm5 }
  0x34   :  { %1940 = vmatprep.mubr.msk.bf16.mxu0 %vm2370_vm8, %v2297_v8  ;;  %1985 = vmatpush3.bf16.msra.mxu0 %v2202_v39  ;;  %v2504_v39 = vshrl.u32 %v31_v2, 7  ;;  %vm2299_vm8 = vmmov 0  }
  0x35   :  { %1967 = vmatpush3.bf16.msra.mxu1 %v2201_v38  ;;  %1986 = vmatprep.subr.bf16.mxu0 %v2203_v40  ;;  %v2215_v38 = vld [vmem:[#allocation2 + $0xe8] sm:$0xff]  }
  0x36   :  { %2016 = vmatprep.subr.bf16.mxu1 %v2210_v33 }
  0x38   :  { %1987 = vmatpush3.bf16.msra.mxu0 %v2203_v40  ;;  %v316_v40 = vsub.s32 0, %v2504_v39 }
  0x39   :  { %1988 = vmatprep.subr.bf16.mxu0 %v2204_v41 }
  0x3b   :  { %1941 = vmatmul.mubr.msk.bf16.gmra.mrb[4].mxu0 %vm2384_vm13, %v2297_v8 }
  0x3c   :  { %1944 = vmatprep.mubr.msk.bf16.mxu0 %vm2394_vm14, %v2297_v8  ;;  %1989 = vmatpush3.bf16.msra.mxu0 %v2204_v41  ;;  %v2510_v41 = vld [vmem:[%s2678_s2 + $0x40] sm:$0xff] }
  0x3d   :  { %1990 = vmatprep.subr.bf16.mxu0 %v2205_v42 }
  0x40   :  { %1991 = vmatpush3.bf16.msra.mxu0 %v2205_v42  ;;  %v317_v42 = vrot.slane %v2510_v41, %v316_v40 }
  0x41   :  { %1992 = vmatprep.subr.bf16.mxu0 %v2206_v43 }
  0x43   :  { %1945 = vmatmul.mubr.msk.bf16.gmra.mrb[8].mxu0 %vm1714_vm3, %v2297_v8 }
  0x44   :  { %1948 = vmatprep.mubr.msk.bf16.mxu0 %vm1716_vm4, %v2297_v8  ;;  %1993 = vmatpush3.bf16.msra.mxu0 %v2206_v43 }
  0x45   :  { %1994 = vmatprep.subr.bf16.mxu0 %v2207_v44 }
  0x48   :  { %1995 = vmatpush3.bf16.msra.mxu0 %v2207_v44 }
  0x49   :  { %1996 = vmatprep.subr.bf16.mxu0 %v2208_v31 }
  0x4b   :  { %1949 = vmatmul.mubr.msk.bf16.gmra.mrb[12].mxu0 %vm1718_vm7, %v2297_v8 }
  0x4c   :  { %1997 = vmatpush3.bf16.msra.mxu0 %v2208_v31 }
  0x4d   :  { %1998 = vmatprep.subr.bf16.mxu0 %v2209_v32 }
  0x50   :  { %1999 = vmatpush3.bf16.msra.mxu0 %v2209_v32 }
 0x106   :  { %v1938_v45 = vpop.f32.mrb[0].mxu0 }
 0x107   :  { %v203_v47 = vpop.f32.mrb[1].mxu0  ;;  %v2449_v56 = vadd.f32 %v1938_v45, %v268_v50 }
 0x108   :  { %v1939_v51 = vpop.f32.mrb[2].mxu0  ;;  %v2445_v54 = vadd.f32 %v266_v48, %v203_v47 }
 0x109   :  { %v2443_v52 = vadd.f32 %v1939_v51, %v269_v46  ;;  %v206_v53 = vpop.f32.mrb[3].mxu0 }
 0x10a   :  { %v2447_v55 = vadd.f32 %v267_v49, %v206_v53 }
 0x10b   :  { %v307_v58 = vpack.c.bf16 %v2443_v52, %v2449_v56 }
 0x10c   :  { %v306_v57 = vpack.c.bf16 %v2447_v55, %v2445_v54 }
 0x10e   :  { %v1942_v59 = vpop.f32.mrb[4].mxu0  ;;  %1968 = vmatprep.mubr.bf16.mxu1 %v306_v57 }
 0x10f   :  { %v219_v61 = vpop.f32.mrb[5].mxu0  ;;  %1969 = vmatmul.mubr.bf16.vlgmr.msra.gmra.mrb[0].mxu1 %v307_v58  ;;  %v2473_v8 = vadd.f32 %v1942_v59, %v272_v0 }
 0x110   :  { %v1943_v1 = vpop.f32.mrb[6].mxu0  ;;  %v2469_v6 = vadd.f32 %v270_v62, %v219_v61  ;;  %2017 = vmatpush3.bf16.msra.mxu1 %v2210_v33 }
 0x111   :  { %v2467_v3 = vadd.f32 %v1943_v1, %v273_v60  ;;  %v222_v5 = vpop.f32.mrb[7].mxu0  ;;  %2018 = vmatprep.subr.bf16.mxu1 %v2211_v34 }
 0x112   :  { %v2471_v7 = vadd.f32 %v271_v63, %v222_v5 }
 0x113   :  { %v309_v10 = vpack.c.bf16 %v2467_v3, %v2473_v8 }
 0x114   :  { %v308_v9 = vpack.c.bf16 %v2471_v7, %v2469_v6  ;;  %2019 = vmatpush3.bf16.msra.mxu1 %v2211_v34 }
 0x115   :  { %2020 = vmatprep.subr.bf16.mxu1 %v2212_v35 }
 0x116   :  { %v1946_v11 = vpop.f32.mrb[8].mxu0  ;;  %1972 = vmatprep.mubr.bf16.mxu1 %v308_v9 }
 0x117   :  { %v235_v12 = vpop.f32.mrb[9].mxu0  ;;  %1973 = vmatmul.mubr.bf16.gmra.mrb[4].mxu1 %v309_v10  ;;  %v2485_v18 = vadd.f32 %v1946_v11, %v268_v50 }
 0x118   :  { %v1947_v13 = vpop.f32.mrb[10].mxu0  ;;  %v2481_v16 = vadd.f32 %v266_v48, %v235_v12  ;;  %2021 = vmatpush3.bf16.msra.mxu1 %v2212_v35 }
 0x119   :  { %v2479_v14 = vadd.f32 %v1947_v13, %v269_v46  ;;  %v238_v15 = vpop.f32.mrb[11].mxu0  ;;  %2022 = vmatprep.subr.bf16.mxu1 %v2213_v36 }
 0x11a   :  { %v2483_v17 = vadd.f32 %v267_v49, %v238_v15 }
 0x11b   :  { %v311_v20 = vpack.c.bf16 %v2479_v14, %v2485_v18 }
 0x11c   :  { %v310_v19 = vpack.c.bf16 %v2483_v17, %v2481_v16  ;;  %2023 = vmatpush3.bf16.msra.mxu1 %v2213_v36 }
 0x11d   :  { %2024 = vmatprep.subr.bf16.mxu1 %v2214_v37 }
 0x11e   :  { %v1950_v21 = vpop.f32.mrb[12].mxu0  ;;  %1976 = vmatprep.mubr.bf16.mxu1 %v310_v19 }
 0x11f   :  { %v251_v22 = vpop.f32.mrb[13].mxu0  ;;  %1977 = vmatmul.mubr.bf16.gmra.mrb[8].mxu1 %v311_v20  ;;  %v2497_v28 = vadd.f32 %v1950_v21, %v272_v0 }
 0x120   :  { %v1951_v23 = vpop.f32.mrb[14].mxu0  ;;  %v2493_v26 = vadd.f32 %v270_v62, %v251_v22  ;;  %2025 = vmatpush3.bf16.msra.mxu1 %v2214_v37 }
 0x121   :  { %v2491_v24 = vadd.f32 %v1951_v23, %v273_v60  ;;  %v254_v25 = vpop.f32.mrb[15].mxu0  ;;  %2026 = vmatprep.subr.bf16.mxu1 %v2215_v38 }
 0x122   :  { %v2495_v27 = vadd.f32 %v271_v63, %v254_v25 }
 0x123   :  { %v313_v30 = vpack.c.bf16 %v2491_v24, %v2497_v28 }
 0x124   :  { %v312_v29 = vpack.c.bf16 %v2495_v27, %v2493_v26  ;;  %2027 = vmatpush3.bf16.msra.mxu1 %v2215_v38 }
 0x126   :  { %1980 = vmatprep.mubr.bf16.mxu1 %v312_v29 }
 0x127   :  { %1981 = vmatmul.mubr.bf16.gmra.mrb[12].mxu1 %v313_v30 }
 0x1e2   :  { %v1970_v43 = vpop.f32.mrb[0].mxu1 }
 0x1e3   :  { %v409_v44 = vadd.f32 %v1970_v43, %v317_v42  ;;  %v400_v45 = vpop.f32.mrb[1].mxu1 }
 0x1e4   :  { %v401_v46 = vadd.f32 %v400_v45, %v317_v42  ;;  %v1971_v47 = vpop.f32.mrb[2].mxu1 }
 0x1e5   :  { %v412_v48 = vadd.f32 %v1971_v47, %v317_v42  ;;  %v403_v49 = vpop.f32.mrb[3].mxu1  ;;  %v465_v50 = vmax.f32 %v409_v44, 0.0 }
 0x1e6   :  { %v404_v2 = vadd.f32 %v403_v49, %v317_v42  ;;  %v463_v53 = vmax.f32 %v401_v46, 0.0 }
 0x1e7   :  { %v466_v51 = vmax.f32 %v412_v48, 0.0 }
 0x1e8   :  { %v464_v57 = vmax.f32 %v404_v2, 0.0 }
 0x1e9   :  { %v496_v58 = vpack.c.bf16 %v466_v51, %v465_v50 }
 0x1ea   :  { %v495_v59 = vpack.c.bf16 %v464_v57, %v463_v53  ;;  %v1974_v60 = vpop.f32.mrb[4].mxu1 }
 0x1eb   :  { %v425_v61 = vadd.f32 %v1974_v60, %v317_v42  ;;  %v416_v62 = vpop.f32.mrb[5].mxu1  ;;  %v2217_v60 = vld [vmem:[#allocation2 + $0xf8] sm:$0xff]  }
 0x1ec   :  { %v417_v63 = vadd.f32 %v416_v62, %v317_v42  ;;  %v1975_v0 = vpop.f32.mrb[6].mxu1  ;;  %2000 = vmatprep.mubr.bf16.mxu0 %v495_v59  ;;  %v2216_v59 = vld [vmem:[#allocation2 + $0xf0] sm:$0xff]   ;;  %v2219_v62 = vld [vmem:[#allocation2 + $0x108] sm:$0xff]  }
 0x1ed   :  { %v428_v1 = vadd.f32 %v1975_v0, %v317_v42  ;;  %v419_v5 = vpop.f32.mrb[7].mxu1  ;;  %2001 = vmatmul.mubr.bf16.vlgmr.msra.gmra.mrb[16].mxu0 %v496_v58  ;;  %v469_v10 = vmax.f32 %v425_v61, 0.0  ;;  %2028 = vmatprep.subr.bf16.mxu1 %v2216_v59  ;;  %v2218_v61 = vld [vmem:[#allocation2 + $0x100] sm:$0xff]  }
 0x1ee   :  { %v420_v9 = vadd.f32 %v419_v5, %v317_v42  ;;  %v467_v12 = vmax.f32 %v417_v63, 0.0  ;;  %2029 = vmatpush3.bf16.msra.mxu1 %v2216_v59  ;;  %2048 = vmatprep.subr.bf16.mxu0 %v2218_v61  ;;  %v2221_v63 = vld [vmem:[#allocation2 + $0x118] sm:$0xff]   ;;  %v2222_v0 = vld [vmem:[#allocation2 + $0x120] sm:$0xff]   ;;  %v666_v5 = vsub.s32 1, %v2504_v39 }
 0x1ef   :  { %v470_v11 = vmax.f32 %v428_v1, 0.0  ;;  %2030 = vmatprep.subr.bf16.mxu1 %v2217_v60  ;;  %2049 = vmatpush3.bf16.msra.mxu0 %v2218_v61  ;;  %v2223_v1 = vld [vmem:[#allocation2 + $0x128] sm:$0xff]  }
 0x1f0   :  { %v468_v13 = vmax.f32 %v420_v9, 0.0  ;;  %2050 = vmatprep.subr.bf16.mxu0 %v2219_v62 }
 0x1f1   :  { %v498_v15 = vpack.c.bf16 %v470_v11, %v469_v10  ;;  %v667_v11 = vrot.slane %v2510_v41, %v666_v5  ;;  %v710_v5 = vsub.s32 2, %v2504_v39 }
 0x1f2   :  { %v497_v19 = vpack.c.bf16 %v468_v13, %v467_v12  ;;  %v1978_v20 = vpop.f32.mrb[8].mxu1  ;;  %2031 = vmatpush3.bf16.msra.mxu1 %v2217_v60 }
 0x1f3   :  { %v441_v21 = vadd.f32 %v1978_v20, %v317_v42  ;;  %v432_v22 = vpop.f32.mrb[9].mxu1  ;;  %2051 = vmatpush3.bf16.msra.mxu0 %v2219_v62 }
 0x1f4   :  { %v433_v23 = vadd.f32 %v432_v22, %v317_v42  ;;  %v1979_v25 = vpop.f32.mrb[10].mxu1  ;;  %2004 = vmatprep.mubr.bf16.mxu0 %v497_v19 }
 0x1f5   :  { %v444_v29 = vadd.f32 %v1979_v25, %v317_v42  ;;  %v435_v30 = vpop.f32.mrb[11].mxu1  ;;  %2005 = vmatmul.mubr.bf16.gmra.mrb[20].mxu0 %v498_v15  ;;  %v473_v32 = vmax.f32 %v441_v21, 0.0 }
 0x1f6   :  { %v436_v31 = vadd.f32 %v435_v30, %v317_v42  ;;  %v471_v34 = vmax.f32 %v433_v23, 0.0 }
 0x1f7   :  { %v474_v33 = vmax.f32 %v444_v29, 0.0 }
 0x1f8   :  { %v472_v35 = vmax.f32 %v436_v31, 0.0 }
 0x1f9   :  { %v500_v36 = vpack.c.bf16 %v474_v33, %v473_v32 }
 0x1fa   :  { %v499_v37 = vpack.c.bf16 %v472_v35, %v471_v34  ;;  %v1982_v38 = vpop.f32.mrb[12].mxu1 }
 0x1fb   :  { %v457_v43 = vadd.f32 %v1982_v38, %v317_v42  ;;  %v448_v44 = vpop.f32.mrb[13].mxu1 }
 0x1fc   :  { %v449_v45 = vadd.f32 %v448_v44, %v317_v42  ;;  %v1983_v46 = vpop.f32.mrb[14].mxu1  ;;  %2008 = vmatprep.mubr.bf16.mxu0 %v499_v37 }
 0x1fd   :  { %v460_v47 = vadd.f32 %v1983_v46, %v317_v42  ;;  %v451_v48 = vpop.f32.mrb[15].mxu1  ;;  %2009 = vmatmul.mubr.bf16.gmra.mrb[24].mxu0 %v500_v36  ;;  %v477_v2 = vmax.f32 %v457_v43, 0.0 }
 0x1fe   :  { %v452_v49 = vadd.f32 %v451_v48, %v317_v42  ;;  %v475_v51 = vmax.f32 %v449_v45, 0.0  ;;  %v2220_v42 = vld [vmem:[#allocation2 + $0x110] sm:$0xff]  }
 0x1ff   :  { %v478_v50 = vmax.f32 %v460_v47, 0.0  ;;  %2052 = vmatprep.subr.bf16.mxu0 %v2220_v42 }
 0x200   :  { %v476_v53 = vmax.f32 %v452_v49, 0.0  ;;  %2053 = vmatpush3.bf16.msra.mxu0 %v2220_v42 }
 0x201   :  { %v502_v57 = vpack.c.bf16 %v478_v50, %v477_v2  ;;  %2054 = vmatprep.subr.bf16.mxu0 %v2221_v63 }
 0x202   :  { %v501_v58 = vpack.c.bf16 %v476_v53, %v475_v51 }
 0x204   :  { %2012 = vmatprep.mubr.bf16.mxu0 %v501_v58  ;;  %2055 = vmatpush3.bf16.msra.mxu0 %v2221_v63 }
 0x205   :  { %2013 = vmatmul.mubr.bf16.gmra.mrb[28].mxu0 %v502_v57  ;;  %2056 = vmatprep.subr.bf16.mxu0 %v2222_v0 }
 0x208   :  { %2057 = vmatpush3.bf16.msra.mxu0 %v2222_v0 }
 0x209   :  { %2058 = vmatprep.subr.bf16.mxu0 %v2223_v1 }
 0x20c   :  { %2059 = vmatpush3.bf16.msra.mxu0 %v2223_v1 }
 0x2c0   :  { %v2002_v9 = vpop.f32.mrb[16].mxu0 }
 0x2c1   :  { %v585_v10 = vpop.f32.mrb[17].mxu0  ;;  %v650_v15 = vadd.f32 %v2002_v9, %v2449_v56  ;;  %v711_v9 = vrot.slane %v2510_v41, %v710_v5 }
 0x2c2   :  { %v648_v12 = vadd.f32 %v585_v10, %v2445_v54  ;;  %v2003_v13 = vpop.f32.mrb[18].mxu0 }
 0x2c3   :  { %v651_v19 = vadd.f32 %v2003_v13, %v2443_v52  ;;  %v588_v20 = vpop.f32.mrb[19].mxu0  ;;  %v2527_v29 = vadd.f32 %v667_v11, %v650_v15 }
 0x2c4   :  { %v649_v21 = vadd.f32 %v588_v20, %v2447_v55  ;;  %v2523_v23 = vadd.f32 %v667_v11, %v648_v12 }
 0x2c5   :  { %v2521_v22 = vadd.f32 %v667_v11, %v651_v19 }
 0x2c6   :  { %v2525_v25 = vadd.f32 %v667_v11, %v649_v21 }
 0x2c7   :  { %v701_v56 = vpack.c.bf16 %v2521_v22, %v2527_v29 }
 0x2c8   :  { %v2006_v30 = vpop.f32.mrb[20].mxu0  ;;  %v700_v54 = vpack.c.bf16 %v2525_v25, %v2523_v23 }
 0x2c9   :  { %v601_v31 = vpop.f32.mrb[21].mxu0  ;;  %v654_v55 = vadd.f32 %v2006_v30, %v2473_v8 }
 0x2ca   :  { %v652_v52 = vadd.f32 %v601_v31, %v2469_v6  ;;  %v2007_v32 = vpop.f32.mrb[22].mxu0  ;;  %2032 = vmatprep.mubr.bf16.mxu1 %v700_v54 }
 0x2cb   :  { %v655_v33 = vadd.f32 %v2007_v32, %v2467_v3  ;;  %v604_v34 = vpop.f32.mrb[23].mxu0  ;;  %2033 = vmatmul.mubr.bf16.vlgmr.msra.gmra.mrb[16].mxu1 %v701_v56  ;;  %v2543_v43 = vadd.f32 %v667_v11, %v654_v55 }
 0x2cc   :  { %v653_v35 = vadd.f32 %v604_v34, %v2471_v7  ;;  %v2539_v37 = vadd.f32 %v667_v11, %v652_v52 }
 0x2cd   :  { %v2537_v36 = vadd.f32 %v667_v11, %v655_v33 }
 0x2ce   :  { %v2541_v38 = vadd.f32 %v667_v11, %v653_v35 }
 0x2cf   :  { %v703_v3 = vpack.c.bf16 %v2537_v36, %v2543_v43 }
 0x2d0   :  { %v2010_v44 = vpop.f32.mrb[24].mxu0  ;;  %v702_v6 = vpack.c.bf16 %v2541_v38, %v2539_v37 }
 0x2d1   :  { %v617_v45 = vpop.f32.mrb[25].mxu0  ;;  %v658_v7 = vadd.f32 %v2010_v44, %v2485_v18 }
 0x2d2   :  { %v656_v8 = vadd.f32 %v617_v45, %v2481_v16  ;;  %v2011_v46 = vpop.f32.mrb[26].mxu0  ;;  %2036 = vmatprep.mubr.bf16.mxu1 %v702_v6 }
 0x2d3   :  { %v659_v47 = vadd.f32 %v2011_v46, %v2479_v14  ;;  %v620_v48 = vpop.f32.mrb[27].mxu0  ;;  %2037 = vmatmul.mubr.bf16.gmra.mrb[20].mxu1 %v703_v3  ;;  %v2559_v53 = vadd.f32 %v667_v11, %v658_v7 }
 0x2d4   :  { %v657_v49 = vadd.f32 %v620_v48, %v2483_v17  ;;  %v2555_v50 = vadd.f32 %v667_v11, %v656_v8 }
 0x2d5   :  { %v2553_v2 = vadd.f32 %v667_v11, %v659_v47 }
 0x2d6   :  { %v2557_v51 = vadd.f32 %v667_v11, %v657_v49 }
 0x2d7   :  { %v705_v14 = vpack.c.bf16 %v2553_v2, %v2559_v53 }
 0x2d8   :  { %v2014_v57 = vpop.f32.mrb[28].mxu0  ;;  %v704_v16 = vpack.c.bf16 %v2557_v51, %v2555_v50 }
 0x2d9   :  { %v633_v58 = vpop.f32.mrb[29].mxu0  ;;  %v662_v17 = vadd.f32 %v2014_v57, %v2497_v28 }
 0x2da   :  { %v660_v18 = vadd.f32 %v633_v58, %v2493_v26  ;;  %v2015_v59 = vpop.f32.mrb[30].mxu0  ;;  %2040 = vmatprep.mubr.bf16.mxu1 %v704_v16 }
 0x2db   :  { %v663_v60 = vadd.f32 %v2015_v59, %v2491_v24  ;;  %v636_v61 = vpop.f32.mrb[31].mxu0  ;;  %2041 = vmatmul.mubr.bf16.gmra.mrb[24].mxu1 %v705_v14  ;;  %v2575_v1 = vadd.f32 %v667_v11, %v662_v17  ;;  %v2224_v24 = vld [vmem:[#allocation2 + $0x130] sm:$0xff]  }
 0x2dc   :  { %v661_v62 = vadd.f32 %v636_v61, %v2495_v27  ;;  %v2571_v63 = vadd.f32 %v667_v11, %v660_v18  ;;  %2060 = vmatprep.subr.bf16.mxu0 %v2224_v24  ;;  %v2225_v27 = vld [vmem:[#allocation2 + $0x138] sm:$0xff]  }
 0x2dd   :  { %v2569_v42 = vadd.f32 %v667_v11, %v663_v60  ;;  %2061 = vmatpush3.bf16.msra.mxu0 %v2224_v24 }
 0x2de   :  { %v2573_v0 = vadd.f32 %v667_v11, %v661_v62  ;;  %2062 = vmatprep.subr.bf16.mxu0 %v2225_v27 }
 0x2df   :  { %v707_v28 = vpack.c.bf16 %v2569_v42, %v2575_v1 }
 0x2e0   :  { %v706_v26 = vpack.c.bf16 %v2573_v0, %v2571_v63 }
 0x2e1   :  { %2063 = vmatpush3.bf16.msra.mxu0 %v2225_v27 }
 0x2e2   :  { %2044 = vmatprep.mubr.bf16.mxu1 %v706_v26 }
 0x2e3   :  { %2045 = vmatmul.mubr.bf16.gmra.mrb[28].mxu1 %v707_v28 }
 0x39e   :  { %v2034_v10 = vpop.f32.mrb[16].mxu1 }
 0x39f   :  { %v803_v11 = vadd.f32 %v2034_v10, %v711_v9  ;;  %v794_v12 = vpop.f32.mrb[17].mxu1 }
 0x3a0   :  { %v795_v13 = vadd.f32 %v794_v12, %v711_v9  ;;  %v2035_v15 = vpop.f32.mrb[18].mxu1 }
 0x3a1   :  { %v806_v19 = vadd.f32 %v2035_v15, %v711_v9  ;;  %v797_v20 = vpop.f32.mrb[19].mxu1  ;;  %v859_v30 = vmax.f32 %v803_v11, 0.0 }
 0x3a2   :  { %v798_v21 = vadd.f32 %v797_v20, %v711_v9  ;;  %v857_v56 = vmax.f32 %v795_v13, 0.0 }
 0x3a3   :  { %v860_v54 = vmax.f32 %v806_v19, 0.0 }
 0x3a4   :  { %v858_v31 = vmax.f32 %v798_v21, 0.0 }
 0x3a5   :  { %v890_v52 = vpack.c.bf16 %v860_v54, %v859_v30 }
 0x3a6   :  { %v889_v32 = vpack.c.bf16 %v858_v31, %v857_v56  ;;  %v2038_v55 = vpop.f32.mrb[20].mxu1 }
 0x3a7   :  { %v819_v33 = vadd.f32 %v2038_v55, %v711_v9  ;;  %v810_v34 = vpop.f32.mrb[21].mxu1  ;;  %v2298_v55 = vmov 0.0  }
 0x3a8   :  { %v811_v35 = vadd.f32 %v810_v34, %v711_v9  ;;  %v2039_v44 = vpop.f32.mrb[22].mxu1  ;;  %2064 = vmatprep.mubr.bf16.mxu0 %v889_v32  ;;  %v2226_v32 = vld [vmem:[#allocation2 + $0x140] sm:$0xff]   ;;  %2080 = vmatprep.subr.bf16.mxu1 %v2298_v55  ;;  %v2229_v34 = vld [vmem:[#allocation2 + $0x158] sm:$0xff]  }
 0x3a9   :  { %v822_v6 = vadd.f32 %v2039_v44, %v711_v9  ;;  %v813_v45 = vpop.f32.mrb[23].mxu1  ;;  %2065 = vmatmul.mubr.bf16.vlgmr.msra.gmra.mrb[32].mxu0 %v890_v52  ;;  %v863_v8 = vmax.f32 %v819_v33, 0.0  ;;  %2100 = vmatprep.subr.bf16.mxu0 %v2298_v55  ;;  %v2227_v33 = vld [vmem:[#allocation2 + $0x148] sm:$0xff]  }
 0x3aa   :  { %v814_v3 = vadd.f32 %v813_v45, %v711_v9  ;;  %v861_v7 = vmax.f32 %v811_v35, 0.0  ;;  %2081 = vmatpush3.bf16.msra.mxu1 %v2226_v32  ;;  %v2230_v35 = vld [vmem:[#allocation2 + $0x160] sm:$0xff]   ;;  %v2231_v44 = vld [vmem:[#allocation2 + $0x168] sm:$0xff]   ;;  %v2233_v45 = vld [vmem:[#allocation2 + $0x178] sm:$0xff]   ;;  %2096 = vmatprep.mubr.msk.bf16.mxu1 %vm2299_vm8, %v2298_v55 }
 0x3ab   :  { %v864_v46 = vmax.f32 %v822_v6, 0.0  ;;  %2082 = vmatprep.subr.bf16.mxu1 %v2298_v55  ;;  %v2232_v6 = vld [vmem:[#allocation2 + $0x170] sm:$0xff]  }
 0x3ac   :  { %v862_v47 = vmax.f32 %v814_v3, 0.0  ;;  %v2234_v3 = vld [vmem:[#allocation2 + $0x180] sm:$0xff]  }
 0x3ad   :  { %v892_v48 = vpack.c.bf16 %v864_v46, %v863_v8  ;;  %2101 = vmatpush3.bf16.msra.mxu0 %v2234_v3  ;;  %v2235_v8 = vld [vmem:[#allocation2 + $0x188] sm:$0xff]   ;;  %v2236_v46 = vld [vmem:[#allocation2 + $0x190] sm:$0xff]  }
 0x3ae   :  { %v891_v49 = vpack.c.bf16 %v862_v47, %v861_v7  ;;  %v2042_v57 = vpop.f32.mrb[24].mxu1  ;;  %2083 = vmatpush3.bf16.msra.mxu1 %v2227_v33  ;;  %2102 = vmatprep.subr.bf16.mxu0 %v2298_v55  ;;  %v2237_v7 = vld [vmem:[#allocation2 + $0x198] sm:$0xff]   ;;  %v2238_v47 = vld [vmem:[#allocation2 + $0x1a0] sm:$0xff]  }
 0x3af   :  { %v835_v16 = vadd.f32 %v2042_v57, %v711_v9  ;;  %v826_v58 = vpop.f32.mrb[25].mxu1  ;;  %2084 = vmatprep.subr.bf16.mxu1 %v2298_v55  ;;  %v1060_v57 = vsub.s32 3, %v2504_v39 }
 0x3b0   :  { %v827_v14 = vadd.f32 %v826_v58, %v711_v9  ;;  %v2043_v18 = vpop.f32.mrb[26].mxu1  ;;  %2068 = vmatprep.mubr.bf16.mxu0 %v891_v49  ;;  %v2240_v49 = vld [vmem:[#allocation2 + $0x1b0] sm:$0xff]  }
 0x3b1   :  { %v838_v59 = vadd.f32 %v2043_v18, %v711_v9  ;;  %v829_v17 = vpop.f32.mrb[27].mxu1  ;;  %2069 = vmatmul.mubr.bf16.gmra.mrb[36].mxu0 %v892_v48  ;;  %v867_v61 = vmax.f32 %v835_v16, 0.0  ;;  %v2239_v48 = vld [vmem:[#allocation2 + $0x1a8] sm:$0xff]   ;;  %v1061_v16 = vrot.slane %v2510_v41, %v1060_v57 }
 0x3b2   :  { %v830_v60 = vadd.f32 %v829_v17, %v711_v9  ;;  %v865_v26 = vmax.f32 %v827_v14, 0.0  ;;  %2103 = vmatpush3.bf16.msra.mxu0 %v2235_v8 }
 0x3b3   :  { %v868_v62 = vmax.f32 %v838_v59, 0.0  ;;  %2104 = vmatprep.subr.bf16.mxu0 %v2298_v55 }
 0x3b4   :  { %v866_v28 = vmax.f32 %v830_v60, 0.0 }
 0x3b5   :  { %v894_v24 = vpack.c.bf16 %v868_v62, %v867_v61 }
 0x3b6   :  { %v893_v27 = vpack.c.bf16 %v866_v28, %v865_v26  ;;  %v2046_v5 = vpop.f32.mrb[28].mxu1  ;;  %2105 = vmatpush3.bf16.msra.mxu0 %v2236_v46 }
 0x3b7   :  { %v851_v10 = vadd.f32 %v2046_v5, %v711_v9  ;;  %v842_v11 = vpop.f32.mrb[29].mxu1  ;;  %2106 = vmatprep.subr.bf16.mxu0 %v2298_v55 }
 0x3b8   :  { %v843_v12 = vadd.f32 %v842_v11, %v711_v9  ;;  %v2047_v13 = vpop.f32.mrb[30].mxu1  ;;  %2072 = vmatprep.mubr.bf16.mxu0 %v893_v27 }
 0x3b9   :  { %v854_v15 = vadd.f32 %v2047_v13, %v711_v9  ;;  %v845_v19 = vpop.f32.mrb[31].mxu1  ;;  %2073 = vmatmul.mubr.bf16.gmra.mrb[40].mxu0 %v894_v24  ;;  %v871_v21 = vmax.f32 %v851_v10, 0.0 }
 0x3ba   :  { %v846_v20 = vadd.f32 %v845_v19, %v711_v9  ;;  %v869_v54 = vmax.f32 %v843_v12, 0.0  ;;  %v2228_v9 = vld [vmem:[#allocation2 + $0x150] sm:$0xff]   ;;  %2107 = vmatpush3.bf16.msra.mxu0 %v2237_v7 }
 0x3bb   :  { %v872_v30 = vmax.f32 %v854_v15, 0.0  ;;  %2085 = vmatpush3.bf16.msra.mxu1 %v2228_v9  ;;  %2108 = vmatprep.subr.bf16.mxu0 %v2298_v55 }
 0x3bc   :  { %v870_v56 = vmax.f32 %v846_v20, 0.0  ;;  %2086 = vmatprep.subr.bf16.mxu1 %v2298_v55 }
 0x3bd   :  { %v896_v31 = vpack.c.bf16 %v872_v30, %v871_v21 }
 0x3be   :  { %v895_v52 = vpack.c.bf16 %v870_v56, %v869_v54  ;;  %2109 = vmatpush3.bf16.msra.mxu0 %v2238_v47 }
 0x3bf   :  { %2087 = vmatpush3.bf16.msra.mxu1 %v2229_v34  ;;  %2110 = vmatprep.subr.bf16.mxu0 %v2298_v55 }
 0x3c0   :  { %2076 = vmatprep.mubr.bf16.mxu0 %v895_v52  ;;  %2088 = vmatprep.subr.bf16.mxu1 %v2298_v55 }
 0x3c1   :  { %2077 = vmatmul.mubr.bf16.gmra.mrb[44].mxu0 %v896_v31 }
 0x3c2   :  { %2116 = vmatprep.mubr.msk.bf16.mxu0 %vm2299_vm8, %v2298_v55  ;;  %2111 = vmatpush3.bf16.msra.mxu0 %v2239_v48 }
 0x3c3   :  { %2089 = vmatpush3.bf16.msra.mxu1 %v2230_v35  ;;  %2112 = vmatprep.subr.bf16.mxu0 %v2298_v55 }
 0x3c4   :  { %2090 = vmatprep.subr.bf16.mxu1 %v2298_v55 }
 0x3c6   :  { %2113 = vmatpush3.bf16.msra.mxu0 %v2240_v49 }
 0x3c7   :  { %2091 = vmatpush3.bf16.msra.mxu1 %v2231_v44  ;;  %2114 = vmatprep.subr.bf16.mxu0 %v2298_v55 }
 0x3c8   :  { %2092 = vmatprep.subr.bf16.mxu1 %v2298_v55 }
 0x3cb   :  { %2093 = vmatpush3.bf16.msra.mxu1 %v2232_v6 }
 0x3cc   :  { %2094 = vmatprep.subr.bf16.mxu1 %v2298_v55 }
 0x3cf   :  { %2095 = vmatpush3.bf16.msra.mxu1 %v2233_v45 }
 0x3d0   :  { %2120 = vmatprep.subr.bf16.mxu1 %v2298_v55 }
 0x47c   :  { %v2066_v58 = vpop.f32.mrb[32].mxu0 }
 0x47d   :  { %v1044_v14 = vadd.f32 %v2066_v58, %v2527_v29  ;;  %v979_v18 = vpop.f32.mrb[33].mxu0 }
 0x47e   :  { %v1042_v59 = vadd.f32 %v979_v18, %v2523_v23  ;;  %v2067_v17 = vpop.f32.mrb[34].mxu0 }
 0x47f   :  { %v1064_v60 = vadd.f32 %v1061_v16, %v1044_v14  ;;  %v1045_v61 = vadd.f32 %v2067_v17, %v2521_v22  ;;  %v982_v62 = vpop.f32.mrb[35].mxu0 }
 0x480   :  { %v1062_v26 = vadd.f32 %v1061_v16, %v1042_v59  ;;  %v1043_v28 = vadd.f32 %v982_v62, %v2525_v25 }
 0x481   :  { %v1065_v24 = vadd.f32 %v1061_v16, %v1045_v61 }
 0x482   :  { %v1078_v27 = vmax.f32 %v1062_v26, %v1064_v60  ;;  %v1063_v5 = vadd.f32 %v1061_v16, %v1043_v28 }
 0x484   :  { %v1079_v10 = vmax.f32 %v1063_v5, %v1065_v24  ;;  %v2070_v11 = vpop.f32.mrb[36].mxu0 }
 0x485   :  { %v995_v12 = vpop.f32.mrb[37].mxu0  ;;  %v1048_v13 = vadd.f32 %v2070_v11, %v2543_v43 }
 0x486   :  { %v1046_v29 = vadd.f32 %v995_v12, %v2539_v37  ;;  %v2071_v15 = vpop.f32.mrb[38].mxu0 }
 0x487   :  { %v998_v23 = vpop.f32.mrb[39].mxu0  ;;  %v1049_v20 = vadd.f32 %v2071_v15, %v2537_v36  ;;  %v1068_v21 = vadd.f32 %v1061_v16, %v1048_v13  ;;  %v2242_v15 = vld [vmem:[#allocation2 + $0x1c0] sm:$0xff]  }
 0x488   :  { %v1066_v19 = vadd.f32 %v1061_v16, %v1046_v29  ;;  %v1047_v22 = vadd.f32 %v998_v23, %v2541_v38  ;;  %v2241_v29 = vld [vmem:[#allocation2 + $0x1b8] sm:$0xff]   ;;  %v2243_v23 = vld [vmem:[#allocation2 + $0x1c8] sm:$0xff]  }
 0x489   :  { %v1069_v56 = vadd.f32 %v1061_v16, %v1049_v20  ;;  %2115 = vmatpush3.bf16.msra.mxu0 %v2241_v29  ;;  %v2245_v20 = vld [vmem:[#allocation2 + $0x1d8] sm:$0xff]  }
 0x48a   :  { %v1080_v30 = vmax.f32 %v1078_v27, %v1066_v19  ;;  %v1067_v25 = vadd.f32 %v1061_v16, %v1047_v22  ;;  %2140 = vmatprep.subr.bf16.mxu0 %v2298_v55  ;;  %v2244_v19 = vld [vmem:[#allocation2 + $0x1d0] sm:$0xff]   ;;  %v2246_v22 = vld [vmem:[#allocation2 + $0x1e0] sm:$0xff]  }
 0x48c   :  { %v1082_v54 = vmax.f32 %v1080_v30, %v1068_v21  ;;  %v1081_v31 = vmax.f32 %v1079_v10, %v1067_v25  ;;  %v2074_v52 = vpop.f32.mrb[40].mxu0  ;;  %v2247_v21 = vld [vmem:[#allocation2 + $0x1e8] sm:$0xff]   ;;  %v1130_v30 = vsub.s32 4, %v2504_v39 }
 0x48d   :  { %v1052_v32 = vadd.f32 %v2074_v52, %v2559_v53  ;;  %v1011_v33 = vpop.f32.mrb[41].mxu0 }
 0x48e   :  { %v1083_v43 = vmax.f32 %v1081_v31, %v1069_v56  ;;  %v1050_v37 = vadd.f32 %v1011_v33, %v2555_v50  ;;  %v2075_v9 = vpop.f32.mrb[42].mxu0  ;;  %v1131_v25 = vrot.slane %v2510_v41, %v1130_v30 }
 0x48f   :  { %v1072_v34 = vadd.f32 %v1061_v16, %v1052_v32  ;;  %v1053_v35 = vadd.f32 %v2075_v9, %v2553_v2  ;;  %v1014_v36 = vpop.f32.mrb[43].mxu0  ;;  %v2249_v9 = vld [vmem:[#allocation2 + $0x1f8] sm:$0xff]  }
 0x490   :  { %v1084_v44 = vmax.f32 %v1082_v54, %v1083_v43  ;;  %v1070_v38 = vadd.f32 %v1061_v16, %v1050_v37  ;;  %v1051_v6 = vadd.f32 %v1014_v36, %v2557_v51  ;;  %v2248_v37 = vld [vmem:[#allocation2 + $0x1f0] sm:$0xff]  }
 0x491   :  { %v1073_v45 = vadd.f32 %v1061_v16, %v1053_v35  ;;  %v2251_v35 = vld [vmem:[#allocation2 + $0x208] sm:$0xff]   ;;  %v2252_v36 = vld [vmem:[#allocation2 + $0x210] sm:$0xff]  }
 0x492   :  { %v1091_v3 = vmax.f32 %v1070_v38, %v1072_v34  ;;  %v1071_v8 = vadd.f32 %v1061_v16, %v1051_v6  ;;  %v1085_v57 = vrot.slane %v1084_v44, 4  ;;  %v2250_v34 = vld [vmem:[#allocation2 + $0x200] sm:$0xff]   ;;  %v2255_v6 = vld [vmem:[#allocation2 + $0x228] sm:$0xff]  }
 0x493   :  { %v2254_v38 = vld [vmem:[#allocation2 + $0x220] sm:$0xff]  }
 0x494   :  { %v1092_v46 = vmax.f32 %v1071_v8, %v1073_v45  ;;  %v2078_v7 = vpop.f32.mrb[44].mxu0  ;;  %v1086_v17 = vmax.f32 %v1084_v44, %v1085_v57  ;;  %v2253_v44 = vld [vmem:[#allocation2 + $0x218] sm:$0xff]   ;;  %v1329_v45 = vsub.s32 5, %v2504_v39  ;;  %v2256_v57 = vld [vmem:[#allocation2 + $0x230] sm:$0xff]  }
 0x495   :  { %v1027_v47 = vpop.f32.mrb[45].mxu0  ;;  %v1056_v53 = vadd.f32 %v2078_v7, %v2575_v1 }
 0x496   :  { %v1054_v48 = vadd.f32 %v1027_v47, %v2571_v63  ;;  %v2079_v50 = vpop.f32.mrb[46].mxu0  ;;  %v1087_v28 = vrot.slane %v1086_v17, 2 }
 0x497   :  { %v1030_v49 = vpop.f32.mrb[47].mxu0  ;;  %v1057_v2 = vadd.f32 %v2079_v50, %v2569_v42  ;;  %v1076_v18 = vadd.f32 %v1061_v16, %v1056_v53 }
 0x498   :  { %v1074_v58 = vadd.f32 %v1061_v16, %v1054_v48  ;;  %v1055_v14 = vadd.f32 %v1030_v49, %v2573_v0  ;;  %v1088_v63 = vmax.f32 %v1086_v17, %v1087_v28  ;;  %v2263_v17 = vld [vmem:[#allocation2 + $0x268] sm:$0xff]  }
 0x499   :  { %v1077_v61 = vadd.f32 %v1061_v16, %v1057_v2  ;;  %v2258_v2 = vld [vmem:[#allocation2 + $0x240] sm:$0xff]  }
 0x49a   :  { %v1093_v51 = vmax.f32 %v1091_v3, %v1074_v58  ;;  %v1075_v59 = vadd.f32 %v1061_v16, %v1055_v14  ;;  %v1089_v10 = vrot.slane %v1088_v63, 1  ;;  %v1330_v3 = vrot.slane %v2510_v41, %v1329_v45  ;;  %v2257_v58 = vld [vmem:[#allocation2 + $0x238] sm:$0xff]   ;;  %v2259_v14 = vld [vmem:[#allocation2 + $0x248] sm:$0xff]  }
 0x49c   :  { %v1095_v60 = vmax.f32 %v1093_v51, %v1076_v18  ;;  %v1094_v62 = vmax.f32 %v1092_v46, %v1075_v59  ;;  %v1090_v42 = vmax.f32 %v1088_v63, %v1089_v10  ;;  %v2260_v18 = vld [vmem:[#allocation2 + $0x250] sm:$0xff]   ;;  %v2261_v51 = vld [vmem:[#allocation2 + $0x258] sm:$0xff]   ;;  %v2262_v59 = vld [vmem:[#allocation2 + $0x260] sm:$0xff]  }
 0x49d   :  { %v2265_v10 = vld [vmem:[#allocation2 + $0x278] sm:$0xff]  }
 0x49e   :  { %v1096_v26 = vmax.f32 %v1094_v62, %v1077_v61 }
 0x4a0   :  { %v1097_v1 = vmax.f32 %v1095_v60, %v1096_v26  ;;  %v1351_v60 = vsub.s32 6, %v2504_v39 }
 0x4a2   :  { %v1098_v24 = vrot.slane %v1097_v1, 4  ;;  %v1352_v61 = vrot.slane %v2510_v41, %v1351_v60 }
 0x4a4   :  { %v1099_v27 = vmax.f32 %v1097_v1, %v1098_v24 }
 0x4a6   :  { %v1100_v5 = vrot.slane %v1099_v27, 2 }
 0x4a8   :  { %v1101_v11 = vmax.f32 %v1099_v27, %v1100_v5  ;;  %v2264_v5 = vld [vmem:[#allocation2 + $0x270] sm:$0xff]  }
 0x4aa   :  { %v1102_v12 = vrot.slane %v1101_v11, 1 }
 0x4ac   :  { %v1103_v0 = vmax.f32 %v1101_v11, %v1102_v12  ;;  %v1550_v11 = vsub.s32 7, %v2504_v39 }
 0x4ae   :  { %v2622_v13 = vsel %vm1106_vm9, %v1103_v0, %v1090_v42  ;;  %v1551_v12 = vrot.slane %v2510_v41, %v1550_v11 }
 0x4af   :  { %v1761_v16 = vpack.c.bf16 %v2622_v13, %v2622_v13  ;;  %v1110_v8 = vsel %vm1109_vm10, %v2622_v13, 0.0 }
 0x4b1   :  { %2097 = vmatmul.mubr.msk.bf16.vlgmr.msra.gmra.mrb[32].mxu1 %vm1760_vm11, %v1761_v16 }
 0x4b2   :  { %2136 = vmatprep.mubr.msk.bf16.mxu1 %vm2299_vm8, %v2298_v55  ;;  %2121 = vmatpush3.bf16.msra.mxu1 %v2242_v15 }
 0x4b3   :  { %2122 = vmatprep.subr.bf16.mxu1 %v2298_v55 }
 0x4b6   :  { %2123 = vmatpush3.bf16.msra.mxu1 %v2243_v23 }
 0x4b7   :  { %2124 = vmatprep.subr.bf16.mxu1 %v2298_v55 }
 0x4ba   :  { %2125 = vmatpush3.bf16.msra.mxu1 %v2244_v19  ;;  %v30_v19 = vld [vmem:[%s2678_s2 + $0x48] sm:$0xff] }
 0x4bb   :  { %2126 = vmatprep.subr.bf16.mxu1 %v2298_v55 }
 0x4be   :  { %2127 = vmatpush3.bf16.msra.mxu1 %v2245_v20 }
 0x4bf   :  { %2128 = vmatprep.subr.bf16.mxu1 %v2298_v55 }
 0x4c2   :  { %2129 = vmatpush3.bf16.msra.mxu1 %v2246_v22 }
 0x4c3   :  { %2130 = vmatprep.subr.bf16.mxu1 %v2298_v55 }
 0x4c6   :  { %2131 = vmatpush3.bf16.msra.mxu1 %v2247_v21 }
 0x4c7   :  { %2132 = vmatprep.subr.bf16.mxu1 %v2298_v55 }
 0x4ca   :  { %2133 = vmatpush3.bf16.msra.mxu1 %v2248_v37 }
 0x4cb   :  { %2134 = vmatprep.subr.bf16.mxu1 %v2298_v55 }
 0x4ce   :  { %2135 = vmatpush3.bf16.msra.mxu1 %v2249_v9 }
 0x4cf   :  { %2160 = vmatprep.subr.bf16.mxu1 %v2298_v55 }
 0x584   :  { %v1214_v54 = vpop.f32.mrb[32].mxu1 }
 0x585   :  { %v1215_v56 = vadd.f32 %v1214_v54, %v1131_v25  ;;  %v2098_v31 = vpop.f32.mrb[33].mxu1 }
 0x586   :  { %v1217_v52 = vpop.f32.mrb[34].mxu1 }
 0x587   :  { %v1220_v32 = vmax.f32 %v1215_v56, 0.0  ;;  %v2099_v33 = vpop.f32.mrb[35].mxu1 }
 0x589   :  { %v1237_v43 = vpack.c.bf16 %v1220_v32, %v1220_v32 }
 0x58b   :  { %2117 = vmatmul.mubr.bf16.vlgmr.msra.gmra.mrb[48].mxu0 %v1237_v43 }
 0x58c   :  { %2156 = vmatprep.mubr.msk.bf16.mxu0 %vm2299_vm8, %v2298_v55  ;;  %2141 = vmatpush3.bf16.msra.mxu0 %v2250_v34 }
 0x58d   :  { %2142 = vmatprep.subr.bf16.mxu0 %v2298_v55 }
 0x590   :  { %2143 = vmatpush3.bf16.msra.mxu0 %v2251_v35 }
 0x591   :  { %2144 = vmatprep.subr.bf16.mxu0 %v2298_v55 }
 0x594   :  { %2145 = vmatpush3.bf16.msra.mxu0 %v2252_v36 }
 0x595   :  { %2146 = vmatprep.subr.bf16.mxu0 %v2298_v55 }
 0x598   :  { %2147 = vmatpush3.bf16.msra.mxu0 %v2253_v44 }
 0x599   :  { %2148 = vmatprep.subr.bf16.mxu0 %v2298_v55 }
 0x59c   :  { %2149 = vmatpush3.bf16.msra.mxu0 %v2254_v38 }
 0x59d   :  { %2150 = vmatprep.subr.bf16.mxu0 %v2298_v55 }
 0x5a0   :  { %2151 = vmatpush3.bf16.msra.mxu0 %v2255_v6 }
 0x5a1   :  { %2152 = vmatprep.subr.bf16.mxu0 %v2298_v55 }
 0x5a4   :  { %2153 = vmatpush3.bf16.msra.mxu0 %v2256_v57 }
 0x5a5   :  { %2154 = vmatprep.subr.bf16.mxu0 %v2298_v55 }
 0x5a8   :  { %2155 = vmatpush3.bf16.msra.mxu0 %v2257_v58 }
 0x65e   :  { %v1320_v46 = vpop.f32.mrb[48].mxu0 }
 0x65f   :  { %v1326_v7 = vadd.f32 %v1320_v46, %v1110_v8  ;;  %v2118_v47 = vpop.f32.mrb[49].mxu0 }
 0x660   :  { %v1323_v53 = vpop.f32.mrb[50].mxu0 }
 0x661   :  { %v1331_v48 = vadd.f32 %v1330_v3, %v1326_v7  ;;  %v2119_v50 = vpop.f32.mrb[51].mxu0 }
 0x663   :  { %v1348_v49 = vpack.c.bf16 %v1331_v48, %v1331_v48 }
 0x665   :  { %2137 = vmatmul.mubr.bf16.vlgmr.msra.gmra.mrb[36].mxu1 %v1348_v49 }
 0x666   :  { %2176 = vmatprep.mubr.msk.bf16.mxu1 %vm2299_vm8, %v2298_v55  ;;  %2161 = vmatpush3.bf16.msra.mxu1 %v2258_v2 }
 0x667   :  { %2162 = vmatprep.subr.bf16.mxu1 %v2298_v55 }
 0x66a   :  { %2163 = vmatpush3.bf16.msra.mxu1 %v2259_v14 }
 0x66b   :  { %2164 = vmatprep.subr.bf16.mxu1 %v2298_v55 }
 0x66e   :  { %2165 = vmatpush3.bf16.msra.mxu1 %v2260_v18 }
 0x66f   :  { %2166 = vmatprep.subr.bf16.mxu1 %v2298_v55 }
 0x672   :  { %2167 = vmatpush3.bf16.msra.mxu1 %v2261_v51 }
 0x673   :  { %2168 = vmatprep.subr.bf16.mxu1 %v2298_v55 }
 0x676   :  { %2169 = vmatpush3.bf16.msra.mxu1 %v2262_v59 }
 0x677   :  { %2170 = vmatprep.subr.bf16.mxu1 %v2298_v55 }
 0x67a   :  { %2171 = vmatpush3.bf16.msra.mxu1 %v2263_v17 }
 0x67b   :  { %2172 = vmatprep.subr.bf16.mxu1 %v2298_v55 }
 0x67e   :  { %2173 = vmatpush3.bf16.msra.mxu1 %v2264_v5 }
 0x67f   :  { %2174 = vmatprep.subr.bf16.mxu1 %v2298_v55  ;;  %v1573_v55 = vrot.slane %v30_v19, %v316_v40 }
 0x682   :  { %2175 = vmatpush3.bf16.msra.mxu1 %v2265_v10 }
 0x738   :  { %v1435_v62 = vpop.f32.mrb[36].mxu1 }
 0x739   :  { %v1436_v26 = vadd.f32 %v1435_v62, %v1352_v61  ;;  %v2138_v28 = vpop.f32.mrb[37].mxu1 }
 0x73a   :  { %v1438_v1 = vpop.f32.mrb[38].mxu1 }
 0x73b   :  { %v1441_v24 = vmax.f32 %v1436_v26, 0.0  ;;  %v2139_v63 = vpop.f32.mrb[39].mxu1 }
 0x73d   :  { %v1458_v27 = vpack.c.bf16 %v1441_v24, %v1441_v24 }
 0x73f   :  { %2157 = vmatmul.mubr.bf16.vlgmr.msra.gmra.mrb[52].mxu0 %v1458_v27 }
 0x812   :  { %v1541_v42 = vpop.f32.mrb[52].mxu0 }
 0x813   :  { %v1547_v0 = vadd.f32 %v1541_v42, %v1331_v48  ;;  %v2158_v13 = vpop.f32.mrb[53].mxu0 }
 0x814   :  { %v1544_v16 = vpop.f32.mrb[54].mxu0 }
 0x815   :  { %v1552_v29 = vadd.f32 %v1551_v12, %v1547_v0  ;;  %v2159_v15 = vpop.f32.mrb[55].mxu0 }
 0x817   :  { %v1569_v23 = vpack.c.bf16 %v1552_v29, %v1552_v29 }
 0x819   :  { %2177 = vmatmul.mubr.bf16.vlgmr.msra.gmra.mrb[40].mxu1 %v1569_v23 }
 0x8ec   :  { %v1656_v20 = vpop.f32.mrb[40].mxu1 }
 0x8ed   :  { %v1657_v22 = vadd.f32 %v1656_v20, %v1573_v55  ;;  %v2178_v41 = vpop.f32.mrb[41].mxu1 }
 0x8ee   :  { %v1659_v21 = vpop.f32.mrb[42].mxu1 }
 0x8ef   :  { %v2179_v30 = vpop.f32.mrb[43].mxu1  ;;  %v1663_v25 = vsel %vm1662_vm12, %v1657_v22, -1e+30 }
 0x8f0   :  { %1664 = vmax.xlane.f32.xlu0 %v1663_v25 }
 0x97d   :  { %v1665_v54 = vpop.xlane.xlu0 %1664 }
 0x97e   :  { %v1666_v56 = vsub.f32 %v1663_v25, %v1665_v54 }
 0x980   :  { %v1667_v31 = vmul.f32 1.442695, %v1666_v56 }
 0x982   :  { %2266 = vpow2.f32 %v1667_v31 }
 0x98c   :  { %v2267_v52 = vpop.eup %2266 }
 0x98d   :  { %1669 = vadd.xlane.f32.xlu0 %v2267_v52 }
 0xa1a   :  { %v1670_v32 = vpop.xlane.xlu0 %1669 }
 0xa1b   :  { %2268 = vlog2.f32 %v1670_v32 }
 0xa25   :  { %v2269_v33 = vpop.eup %2268 }
 0xa26   :  { %v1672_v39 = vmul.f32 0.6931472, %v2269_v33 }
 0xa28   :  { %v1673_v40 = vsub.f32 %v1666_v56, %v1672_v39 }
 0xa2a   :  { %1674 = vst [vmem:[%s2679_s3] sm:$0xff] %v1673_v40 }
 0xa2b   :  { %1679 = vsyncpa [#allocation3], 1 }

</bundles_post_ra>
